<compile_context>
chip_gen: v5e
topology: v5e:2x2
jax: 0.10.0
libtpu: 0.0.40
codegen_flags: <defaults>
</compile_context>

<pallas_src>
import jax
import jax.numpy as jnp
from jax.experimental import pallas as pl
from jax.experimental.pallas import tpu as pltpu

INPUT_FEATURES = 1
LAYER1_NEURONS = 4
LAYER2_NEURONS = 4
LAYER3_NEURONS = 4
LAYER4_NEURONS = 4
OUTPUT_NEURONS = 1

# Flat parameter layout (weights stored transposed, (in, out) row-major):
#   W1: 1x4, b1: 4 | W2: 4x4, b2: 4 | W3: 4x4, b3: 4 | W4: 4x4, b4: 4 | Wo: 4x1, bo: 1
_W1, _B1 = 0, 4
_W2, _B2 = 8, 24
_W3, _B3 = 28, 44
_W4, _B4 = 48, 64
_WO, _BO = 68, 72
N_PARAMS = 73

# Batch tile: (8 sublanes, 1024 lanes) f32 = 32 KiB per block -> comfortably
# double-buffered on every chip (incl. v7x 64 MiB VMEM) while amortizing the
# ~0.35 us per-grid-step overhead.
BLOCK_ROWS = 8
BLOCK_COLS = 1024
BLOCK_ELEMS = BLOCK_ROWS * BLOCK_COLS


def _mlp_kernel(p_ref, x_ref, o_ref):
    """p_ref: (N_PARAMS,) f32 in SMEM (resident); x_ref/o_ref: (BLOCK_ROWS, BLOCK_COLS) f32."""
    x = x_ref[...]  # batch elements spread over sublanes + lanes (fully dense vregs)

    # Layer 1: in=1 -> out=4, tanh.  Pure VPU broadcast FMA + EUP tanh.
    h = [jnp.tanh(p_ref[_W1 + j] * x + p_ref[_B1 + j]) for j in range(4)]

    # Layers 2..4: in=4 -> out=4, tanh.
    for w_off, b_off in ((_W2, _B2), (_W3, _B3), (_W4, _B4)):
        h = [
            jnp.tanh(
                h[0] * p_ref[w_off + 0 * 4 + j]
                + h[1] * p_ref[w_off + 1 * 4 + j]
                + h[2] * p_ref[w_off + 2 * 4 + j]
                + h[3] * p_ref[w_off + 3 * 4 + j]
                + p_ref[b_off + j]
            )
            for j in range(4)
        ]

    # Output layer: in=4 -> out=1, identity activation.
    out = (h[0] * p_ref[_WO + 0]
           + h[1] * p_ref[_WO + 1]
           + h[2] * p_ref[_WO + 2]
           + h[3] * p_ref[_WO + 3]
           + p_ref[_BO])
    o_ref[...] = out


def init_params(key):
    """Deterministic init mimicking torch.nn.Linear's U(-k, k), k = 1/sqrt(fan_in).
    Weights are stored transposed: (in_features, out_features)."""
    dims = [INPUT_FEATURES, LAYER1_NEURONS, LAYER2_NEURONS,
            LAYER3_NEURONS, LAYER4_NEURONS, OUTPUT_NEURONS]
    params = []
    keys = jax.random.split(key, 2 * (len(dims) - 1))
    for i in range(len(dims) - 1):
        fan_in, fan_out = dims[i], dims[i + 1]
        k = 1.0 / jnp.sqrt(jnp.float32(fan_in))
        w = jax.random.uniform(keys[2 * i], (fan_in, fan_out),
                               jnp.float32, minval=-k, maxval=k)
        b = jax.random.uniform(keys[2 * i + 1], (1, fan_out),
                               jnp.float32, minval=-k, maxval=k)
        params.append((w, b))
    return params


def pack_params(params):
    """Flatten all (W, b) pairs into one (N_PARAMS,) f32 vector for SMEM."""
    flat = []
    for w, b in params:
        flat.append(w.reshape(-1))   # (in, out) row-major: w[k, j] at k*out + j
        flat.append(b.reshape(-1))
    p = jnp.concatenate(flat).astype(jnp.float32)
    assert p.shape == (N_PARAMS,)
    return p


def neural_network_forward(x, params):
    """x: (batch, INPUT_FEATURES) float32 -> (batch, OUTPUT_NEURONS) float32."""
    batch = x.shape[0]
    p_flat = pack_params(params)

    padded = pl.cdiv(batch, BLOCK_ELEMS) * BLOCK_ELEMS
    n_blocks = padded // BLOCK_ELEMS

    # Wrapper-side layout change: batch -> (sublane, lane) dense 2-D slab.
    xt = x.reshape(-1).astype(jnp.float32)                 # INPUT_FEATURES == 1
    xt = jnp.pad(xt, (0, padded - batch))
    xt = xt.reshape(n_blocks * BLOCK_ROWS, BLOCK_COLS)

    out2d = pl.pallas_call(
        _mlp_kernel,
        out_shape=jax.ShapeDtypeStruct(xt.shape, jnp.float32),
        grid=(n_blocks,),
        in_specs=[
            pl.BlockSpec(memory_space=pltpu.MemorySpace.SMEM),      # params, resident
            pl.BlockSpec((BLOCK_ROWS, BLOCK_COLS), lambda i: (i, 0)),
        ],
        out_specs=pl.BlockSpec((BLOCK_ROWS, BLOCK_COLS), lambda i: (i, 0)),
        compiler_params=pltpu.CompilerParams(
            dimension_semantics=("parallel",)),                     # 2 TCs on v7x
    )(p_flat, xt)

    return out2d.reshape(-1)[:batch].reshape(batch, OUTPUT_NEURONS)


def _reference_forward(x, params):
    h = x
    for i, (w, b) in enumerate(params):
        h = h @ w + b
        if i < len(params) - 1:
            h = jnp.tanh(h)
    return h


if __name__ == "__main__":
    key = jax.random.PRNGKey(0)
    pkey, xkey = jax.random.split(key)

    params = init_params(pkey)

    batch = 8
    x = jax.random.normal(xkey, (batch, INPUT_FEATURES), dtype=jnp.float32)

    out = neural_network_forward(x, params)
    out = jax.block_until_ready(out)

    ref = _reference_forward(x, params)
    assert out.shape == (batch, OUTPUT_NEURONS)
    assert jnp.allclose(out, ref, atol=1e-5, rtol=1e-5)

    print("KERNEL_OK")
</pallas_src>

<mosaic_0001>
module attributes {stable_mosaic.version = 11 : i64} {
  func.func @_mlp_kernel(%arg0: i32, %arg1: memref<73xf32, #tpu.memory_space<smem>>, %arg2: memref<8x1024xf32, #tpu.memory_space<vmem>>, %arg3: memref<8x1024xf32, #tpu.memory_space<vmem>>) attributes {dimension_semantics = [#tpu.dimension_semantics<parallel>], iteration_bounds = array<i64: 1>, scalar_prefetch = 0 : i64, scratch_operands = 0 : i64, tpu.core_type = #tpu.core_type<tc>, window_params = [{transform_indices = @transform_0, window_bounds = array<i64: 73>}, {transform_indices = @transform_1, window_bounds = array<i64: 8, 1024>}, {transform_indices = @transform_2, window_bounds = array<i64: 8, 1024>}]} {
    %c0 = arith.constant 0 : index
    %c0_0 = arith.constant 0 : index
    %0 = vector.load %arg2[%c0, %c0_0] : memref<8x1024xf32, #tpu.memory_space<vmem>>, vector<8x1024xf32>
    %c0_1 = arith.constant 0 : index
    %1 = memref.load %arg1[%c0_1] : memref<73xf32, #tpu.memory_space<smem>>
    %2 = vector.broadcast %1 : f32 to vector<8x1024xf32>
    %3 = arith.mulf %2, %0 : vector<8x1024xf32>
    %c4 = arith.constant 4 : index
    %4 = memref.load %arg1[%c4] : memref<73xf32, #tpu.memory_space<smem>>
    %5 = vector.broadcast %4 : f32 to vector<8x1024xf32>
    %6 = arith.addf %3, %5 : vector<8x1024xf32>
    %7 = math.tanh %6 : vector<8x1024xf32>
    %c1 = arith.constant 1 : index
    %8 = memref.load %arg1[%c1] : memref<73xf32, #tpu.memory_space<smem>>
    %9 = vector.broadcast %8 : f32 to vector<8x1024xf32>
    %10 = arith.mulf %9, %0 : vector<8x1024xf32>
    %c5 = arith.constant 5 : index
    %11 = memref.load %arg1[%c5] : memref<73xf32, #tpu.memory_space<smem>>
    %12 = vector.broadcast %11 : f32 to vector<8x1024xf32>
    %13 = arith.addf %10, %12 : vector<8x1024xf32>
    %14 = math.tanh %13 : vector<8x1024xf32>
    %c2 = arith.constant 2 : index
    %15 = memref.load %arg1[%c2] : memref<73xf32, #tpu.memory_space<smem>>
    %16 = vector.broadcast %15 : f32 to vector<8x1024xf32>
    %17 = arith.mulf %16, %0 : vector<8x1024xf32>
    %c6 = arith.constant 6 : index
    %18 = memref.load %arg1[%c6] : memref<73xf32, #tpu.memory_space<smem>>
    %19 = vector.broadcast %18 : f32 to vector<8x1024xf32>
    %20 = arith.addf %17, %19 : vector<8x1024xf32>
    %21 = math.tanh %20 : vector<8x1024xf32>
    %c3 = arith.constant 3 : index
    %22 = memref.load %arg1[%c3] : memref<73xf32, #tpu.memory_space<smem>>
    %23 = vector.broadcast %22 : f32 to vector<8x1024xf32>
    %24 = arith.mulf %23, %0 : vector<8x1024xf32>
    %c7 = arith.constant 7 : index
    %25 = memref.load %arg1[%c7] : memref<73xf32, #tpu.memory_space<smem>>
    %26 = vector.broadcast %25 : f32 to vector<8x1024xf32>
    %27 = arith.addf %24, %26 : vector<8x1024xf32>
    %28 = math.tanh %27 : vector<8x1024xf32>
    %c8 = arith.constant 8 : index
    %29 = memref.load %arg1[%c8] : memref<73xf32, #tpu.memory_space<smem>>
    %30 = vector.broadcast %29 : f32 to vector<8x1024xf32>
    %31 = arith.mulf %7, %30 : vector<8x1024xf32>
    %c12 = arith.constant 12 : index
    %32 = memref.load %arg1[%c12] : memref<73xf32, #tpu.memory_space<smem>>
    %33 = vector.broadcast %32 : f32 to vector<8x1024xf32>
    %34 = arith.mulf %14, %33 : vector<8x1024xf32>
    %35 = arith.addf %31, %34 : vector<8x1024xf32>
    %c16 = arith.constant 16 : index
    %36 = memref.load %arg1[%c16] : memref<73xf32, #tpu.memory_space<smem>>
    %37 = vector.broadcast %36 : f32 to vector<8x1024xf32>
    %38 = arith.mulf %21, %37 : vector<8x1024xf32>
    %39 = arith.addf %35, %38 : vector<8x1024xf32>
    %c20 = arith.constant 20 : index
    %40 = memref.load %arg1[%c20] : memref<73xf32, #tpu.memory_space<smem>>
    %41 = vector.broadcast %40 : f32 to vector<8x1024xf32>
    %42 = arith.mulf %28, %41 : vector<8x1024xf32>
    %43 = arith.addf %39, %42 : vector<8x1024xf32>
    %c24 = arith.constant 24 : index
    %44 = memref.load %arg1[%c24] : memref<73xf32, #tpu.memory_space<smem>>
    %45 = vector.broadcast %44 : f32 to vector<8x1024xf32>
    %46 = arith.addf %43, %45 : vector<8x1024xf32>
    %47 = math.tanh %46 : vector<8x1024xf32>
    %c9 = arith.constant 9 : index
    %48 = memref.load %arg1[%c9] : memref<73xf32, #tpu.memory_space<smem>>
    %49 = vector.broadcast %48 : f32 to vector<8x1024xf32>
    %50 = arith.mulf %7, %49 : vector<8x1024xf32>
    %c13 = arith.constant 13 : index
    %51 = memref.load %arg1[%c13] : memref<73xf32, #tpu.memory_space<smem>>
    %52 = vector.broadcast %51 : f32 to vector<8x1024xf32>
    %53 = arith.mulf %14, %52 : vector<8x1024xf32>
    %54 = arith.addf %50, %53 : vector<8x1024xf32>
    %c17 = arith.constant 17 : index
    %55 = memref.load %arg1[%c17] : memref<73xf32, #tpu.memory_space<smem>>
    %56 = vector.broadcast %55 : f32 to vector<8x1024xf32>
    %57 = arith.mulf %21, %56 : vector<8x1024xf32>
    %58 = arith.addf %54, %57 : vector<8x1024xf32>
    %c21 = arith.constant 21 : index
    %59 = memref.load %arg1[%c21] : memref<73xf32, #tpu.memory_space<smem>>
    %60 = vector.broadcast %59 : f32 to vector<8x1024xf32>
    %61 = arith.mulf %28, %60 : vector<8x1024xf32>
    %62 = arith.addf %58, %61 : vector<8x1024xf32>
    %c25 = arith.constant 25 : index
    %63 = memref.load %arg1[%c25] : memref<73xf32, #tpu.memory_space<smem>>
    %64 = vector.broadcast %63 : f32 to vector<8x1024xf32>
    %65 = arith.addf %62, %64 : vector<8x1024xf32>
    %66 = math.tanh %65 : vector<8x1024xf32>
    %c10 = arith.constant 10 : index
    %67 = memref.load %arg1[%c10] : memref<73xf32, #tpu.memory_space<smem>>
    %68 = vector.broadcast %67 : f32 to vector<8x1024xf32>
    %69 = arith.mulf %7, %68 : vector<8x1024xf32>
    %c14 = arith.constant 14 : index
    %70 = memref.load %arg1[%c14] : memref<73xf32, #tpu.memory_space<smem>>
    %71 = vector.broadcast %70 : f32 to vector<8x1024xf32>
    %72 = arith.mulf %14, %71 : vector<8x1024xf32>
    %73 = arith.addf %69, %72 : vector<8x1024xf32>
    %c18 = arith.constant 18 : index
    %74 = memref.load %arg1[%c18] : memref<73xf32, #tpu.memory_space<smem>>
    %75 = vector.broadcast %74 : f32 to vector<8x1024xf32>
    %76 = arith.mulf %21, %75 : vector<8x1024xf32>
    %77 = arith.addf %73, %76 : vector<8x1024xf32>
    %c22 = arith.constant 22 : index
    %78 = memref.load %arg1[%c22] : memref<73xf32, #tpu.memory_space<smem>>
    %79 = vector.broadcast %78 : f32 to vector<8x1024xf32>
    %80 = arith.mulf %28, %79 : vector<8x1024xf32>
    %81 = arith.addf %77, %80 : vector<8x1024xf32>
    %c26 = arith.constant 26 : index
    %82 = memref.load %arg1[%c26] : memref<73xf32, #tpu.memory_space<smem>>
    %83 = vector.broadcast %82 : f32 to vector<8x1024xf32>
    %84 = arith.addf %81, %83 : vector<8x1024xf32>
    %85 = math.tanh %84 : vector<8x1024xf32>
    %c11 = arith.constant 11 : index
    %86 = memref.load %arg1[%c11] : memref<73xf32, #tpu.memory_space<smem>>
    %87 = vector.broadcast %86 : f32 to vector<8x1024xf32>
    %88 = arith.mulf %7, %87 : vector<8x1024xf32>
    %c15 = arith.constant 15 : index
    %89 = memref.load %arg1[%c15] : memref<73xf32, #tpu.memory_space<smem>>
    %90 = vector.broadcast %89 : f32 to vector<8x1024xf32>
    %91 = arith.mulf %14, %90 : vector<8x1024xf32>
    %92 = arith.addf %88, %91 : vector<8x1024xf32>
    %c19 = arith.constant 19 : index
    %93 = memref.load %arg1[%c19] : memref<73xf32, #tpu.memory_space<smem>>
    %94 = vector.broadcast %93 : f32 to vector<8x1024xf32>
    %95 = arith.mulf %21, %94 : vector<8x1024xf32>
    %96 = arith.addf %92, %95 : vector<8x1024xf32>
    %c23 = arith.constant 23 : index
    %97 = memref.load %arg1[%c23] : memref<73xf32, #tpu.memory_space<smem>>
    %98 = vector.broadcast %97 : f32 to vector<8x1024xf32>
    %99 = arith.mulf %28, %98 : vector<8x1024xf32>
    %100 = arith.addf %96, %99 : vector<8x1024xf32>
    %c27 = arith.constant 27 : index
    %101 = memref.load %arg1[%c27] : memref<73xf32, #tpu.memory_space<smem>>
    %102 = vector.broadcast %101 : f32 to vector<8x1024xf32>
    %103 = arith.addf %100, %102 : vector<8x1024xf32>
    %104 = math.tanh %103 : vector<8x1024xf32>
    %c28 = arith.constant 28 : index
    %105 = memref.load %arg1[%c28] : memref<73xf32, #tpu.memory_space<smem>>
    %106 = vector.broadcast %105 : f32 to vector<8x1024xf32>
    %107 = arith.mulf %47, %106 : vector<8x1024xf32>
    %c32 = arith.constant 32 : index
    %108 = memref.load %arg1[%c32] : memref<73xf32, #tpu.memory_space<smem>>
    %109 = vector.broadcast %108 : f32 to vector<8x1024xf32>
    %110 = arith.mulf %66, %109 : vector<8x1024xf32>
    %111 = arith.addf %107, %110 : vector<8x1024xf32>
    %c36 = arith.constant 36 : index
    %112 = memref.load %arg1[%c36] : memref<73xf32, #tpu.memory_space<smem>>
    %113 = vector.broadcast %112 : f32 to vector<8x1024xf32>
    %114 = arith.mulf %85, %113 : vector<8x1024xf32>
    %115 = arith.addf %111, %114 : vector<8x1024xf32>
    %c40 = arith.constant 40 : index
    %116 = memref.load %arg1[%c40] : memref<73xf32, #tpu.memory_space<smem>>
    %117 = vector.broadcast %116 : f32 to vector<8x1024xf32>
    %118 = arith.mulf %104, %117 : vector<8x1024xf32>
    %119 = arith.addf %115, %118 : vector<8x1024xf32>
    %c44 = arith.constant 44 : index
    %120 = memref.load %arg1[%c44] : memref<73xf32, #tpu.memory_space<smem>>
    %121 = vector.broadcast %120 : f32 to vector<8x1024xf32>
    %122 = arith.addf %119, %121 : vector<8x1024xf32>
    %123 = math.tanh %122 : vector<8x1024xf32>
    %c29 = arith.constant 29 : index
    %124 = memref.load %arg1[%c29] : memref<73xf32, #tpu.memory_space<smem>>
    %125 = vector.broadcast %124 : f32 to vector<8x1024xf32>
    %126 = arith.mulf %47, %125 : vector<8x1024xf32>
    %c33 = arith.constant 33 : index
    %127 = memref.load %arg1[%c33] : memref<73xf32, #tpu.memory_space<smem>>
    %128 = vector.broadcast %127 : f32 to vector<8x1024xf32>
    %129 = arith.mulf %66, %128 : vector<8x1024xf32>
    %130 = arith.addf %126, %129 : vector<8x1024xf32>
    %c37 = arith.constant 37 : index
    %131 = memref.load %arg1[%c37] : memref<73xf32, #tpu.memory_space<smem>>
    %132 = vector.broadcast %131 : f32 to vector<8x1024xf32>
    %133 = arith.mulf %85, %132 : vector<8x1024xf32>
    %134 = arith.addf %130, %133 : vector<8x1024xf32>
    %c41 = arith.constant 41 : index
    %135 = memref.load %arg1[%c41] : memref<73xf32, #tpu.memory_space<smem>>
    %136 = vector.broadcast %135 : f32 to vector<8x1024xf32>
    %137 = arith.mulf %104, %136 : vector<8x1024xf32>
    %138 = arith.addf %134, %137 : vector<8x1024xf32>
    %c45 = arith.constant 45 : index
    %139 = memref.load %arg1[%c45] : memref<73xf32, #tpu.memory_space<smem>>
    %140 = vector.broadcast %139 : f32 to vector<8x1024xf32>
    %141 = arith.addf %138, %140 : vector<8x1024xf32>
    %142 = math.tanh %141 : vector<8x1024xf32>
    %c30 = arith.constant 30 : index
    %143 = memref.load %arg1[%c30] : memref<73xf32, #tpu.memory_space<smem>>
    %144 = vector.broadcast %143 : f32 to vector<8x1024xf32>
    %145 = arith.mulf %47, %144 : vector<8x1024xf32>
    %c34 = arith.constant 34 : index
    %146 = memref.load %arg1[%c34] : memref<73xf32, #tpu.memory_space<smem>>
    %147 = vector.broadcast %146 : f32 to vector<8x1024xf32>
    %148 = arith.mulf %66, %147 : vector<8x1024xf32>
    %149 = arith.addf %145, %148 : vector<8x1024xf32>
    %c38 = arith.constant 38 : index
    %150 = memref.load %arg1[%c38] : memref<73xf32, #tpu.memory_space<smem>>
    %151 = vector.broadcast %150 : f32 to vector<8x1024xf32>
    %152 = arith.mulf %85, %151 : vector<8x1024xf32>
    %153 = arith.addf %149, %152 : vector<8x1024xf32>
    %c42 = arith.constant 42 : index
    %154 = memref.load %arg1[%c42] : memref<73xf32, #tpu.memory_space<smem>>
    %155 = vector.broadcast %154 : f32 to vector<8x1024xf32>
    %156 = arith.mulf %104, %155 : vector<8x1024xf32>
    %157 = arith.addf %153, %156 : vector<8x1024xf32>
    %c46 = arith.constant 46 : index
    %158 = memref.load %arg1[%c46] : memref<73xf32, #tpu.memory_space<smem>>
    %159 = vector.broadcast %158 : f32 to vector<8x1024xf32>
    %160 = arith.addf %157, %159 : vector<8x1024xf32>
    %161 = math.tanh %160 : vector<8x1024xf32>
    %c31 = arith.constant 31 : index
    %162 = memref.load %arg1[%c31] : memref<73xf32, #tpu.memory_space<smem>>
    %163 = vector.broadcast %162 : f32 to vector<8x1024xf32>
    %164 = arith.mulf %47, %163 : vector<8x1024xf32>
    %c35 = arith.constant 35 : index
    %165 = memref.load %arg1[%c35] : memref<73xf32, #tpu.memory_space<smem>>
    %166 = vector.broadcast %165 : f32 to vector<8x1024xf32>
    %167 = arith.mulf %66, %166 : vector<8x1024xf32>
    %168 = arith.addf %164, %167 : vector<8x1024xf32>
    %c39 = arith.constant 39 : index
    %169 = memref.load %arg1[%c39] : memref<73xf32, #tpu.memory_space<smem>>
    %170 = vector.broadcast %169 : f32 to vector<8x1024xf32>
    %171 = arith.mulf %85, %170 : vector<8x1024xf32>
    %172 = arith.addf %168, %171 : vector<8x1024xf32>
    %c43 = arith.constant 43 : index
    %173 = memref.load %arg1[%c43] : memref<73xf32, #tpu.memory_space<smem>>
    %174 = vector.broadcast %173 : f32 to vector<8x1024xf32>
    %175 = arith.mulf %104, %174 : vector<8x1024xf32>
    %176 = arith.addf %172, %175 : vector<8x1024xf32>
    %c47 = arith.constant 47 : index
    %177 = memref.load %arg1[%c47] : memref<73xf32, #tpu.memory_space<smem>>
    %178 = vector.broadcast %177 : f32 to vector<8x1024xf32>
    %179 = arith.addf %176, %178 : vector<8x1024xf32>
    %180 = math.tanh %179 : vector<8x1024xf32>
    %c48 = arith.constant 48 : index
    %181 = memref.load %arg1[%c48] : memref<73xf32, #tpu.memory_space<smem>>
    %182 = vector.broadcast %181 : f32 to vector<8x1024xf32>
    %183 = arith.mulf %123, %182 : vector<8x1024xf32>
    %c52 = arith.constant 52 : index
    %184 = memref.load %arg1[%c52] : memref<73xf32, #tpu.memory_space<smem>>
    %185 = vector.broadcast %184 : f32 to vector<8x1024xf32>
    %186 = arith.mulf %142, %185 : vector<8x1024xf32>
    %187 = arith.addf %183, %186 : vector<8x1024xf32>
    %c56 = arith.constant 56 : index
    %188 = memref.load %arg1[%c56] : memref<73xf32, #tpu.memory_space<smem>>
    %189 = vector.broadcast %188 : f32 to vector<8x1024xf32>
    %190 = arith.mulf %161, %189 : vector<8x1024xf32>
    %191 = arith.addf %187, %190 : vector<8x1024xf32>
    %c60 = arith.constant 60 : index
    %192 = memref.load %arg1[%c60] : memref<73xf32, #tpu.memory_space<smem>>
    %193 = vector.broadcast %192 : f32 to vector<8x1024xf32>
    %194 = arith.mulf %180, %193 : vector<8x1024xf32>
    %195 = arith.addf %191, %194 : vector<8x1024xf32>
    %c64 = arith.constant 64 : index
    %196 = memref.load %arg1[%c64] : memref<73xf32, #tpu.memory_space<smem>>
    %197 = vector.broadcast %196 : f32 to vector<8x1024xf32>
    %198 = arith.addf %195, %197 : vector<8x1024xf32>
    %199 = math.tanh %198 : vector<8x1024xf32>
    %c49 = arith.constant 49 : index
    %200 = memref.load %arg1[%c49] : memref<73xf32, #tpu.memory_space<smem>>
    %201 = vector.broadcast %200 : f32 to vector<8x1024xf32>
    %202 = arith.mulf %123, %201 : vector<8x1024xf32>
    %c53 = arith.constant 53 : index
    %203 = memref.load %arg1[%c53] : memref<73xf32, #tpu.memory_space<smem>>
    %204 = vector.broadcast %203 : f32 to vector<8x1024xf32>
    %205 = arith.mulf %142, %204 : vector<8x1024xf32>
    %206 = arith.addf %202, %205 : vector<8x1024xf32>
    %c57 = arith.constant 57 : index
    %207 = memref.load %arg1[%c57] : memref<73xf32, #tpu.memory_space<smem>>
    %208 = vector.broadcast %207 : f32 to vector<8x1024xf32>
    %209 = arith.mulf %161, %208 : vector<8x1024xf32>
    %210 = arith.addf %206, %209 : vector<8x1024xf32>
    %c61 = arith.constant 61 : index
    %211 = memref.load %arg1[%c61] : memref<73xf32, #tpu.memory_space<smem>>
    %212 = vector.broadcast %211 : f32 to vector<8x1024xf32>
    %213 = arith.mulf %180, %212 : vector<8x1024xf32>
    %214 = arith.addf %210, %213 : vector<8x1024xf32>
    %c65 = arith.constant 65 : index
    %215 = memref.load %arg1[%c65] : memref<73xf32, #tpu.memory_space<smem>>
    %216 = vector.broadcast %215 : f32 to vector<8x1024xf32>
    %217 = arith.addf %214, %216 : vector<8x1024xf32>
    %218 = math.tanh %217 : vector<8x1024xf32>
    %c50 = arith.constant 50 : index
    %219 = memref.load %arg1[%c50] : memref<73xf32, #tpu.memory_space<smem>>
    %220 = vector.broadcast %219 : f32 to vector<8x1024xf32>
    %221 = arith.mulf %123, %220 : vector<8x1024xf32>
    %c54 = arith.constant 54 : index
    %222 = memref.load %arg1[%c54] : memref<73xf32, #tpu.memory_space<smem>>
    %223 = vector.broadcast %222 : f32 to vector<8x1024xf32>
    %224 = arith.mulf %142, %223 : vector<8x1024xf32>
    %225 = arith.addf %221, %224 : vector<8x1024xf32>
    %c58 = arith.constant 58 : index
    %226 = memref.load %arg1[%c58] : memref<73xf32, #tpu.memory_space<smem>>
    %227 = vector.broadcast %226 : f32 to vector<8x1024xf32>
    %228 = arith.mulf %161, %227 : vector<8x1024xf32>
    %229 = arith.addf %225, %228 : vector<8x1024xf32>
    %c62 = arith.constant 62 : index
    %230 = memref.load %arg1[%c62] : memref<73xf32, #tpu.memory_space<smem>>
    %231 = vector.broadcast %230 : f32 to vector<8x1024xf32>
    %232 = arith.mulf %180, %231 : vector<8x1024xf32>
    %233 = arith.addf %229, %232 : vector<8x1024xf32>
    %c66 = arith.constant 66 : index
    %234 = memref.load %arg1[%c66] : memref<73xf32, #tpu.memory_space<smem>>
    %235 = vector.broadcast %234 : f32 to vector<8x1024xf32>
    %236 = arith.addf %233, %235 : vector<8x1024xf32>
    %237 = math.tanh %236 : vector<8x1024xf32>
    %c51 = arith.constant 51 : index
    %238 = memref.load %arg1[%c51] : memref<73xf32, #tpu.memory_space<smem>>
    %239 = vector.broadcast %238 : f32 to vector<8x1024xf32>
    %240 = arith.mulf %123, %239 : vector<8x1024xf32>
    %c55 = arith.constant 55 : index
    %241 = memref.load %arg1[%c55] : memref<73xf32, #tpu.memory_space<smem>>
    %242 = vector.broadcast %241 : f32 to vector<8x1024xf32>
    %243 = arith.mulf %142, %242 : vector<8x1024xf32>
    %244 = arith.addf %240, %243 : vector<8x1024xf32>
    %c59 = arith.constant 59 : index
    %245 = memref.load %arg1[%c59] : memref<73xf32, #tpu.memory_space<smem>>
    %246 = vector.broadcast %245 : f32 to vector<8x1024xf32>
    %247 = arith.mulf %161, %246 : vector<8x1024xf32>
    %248 = arith.addf %244, %247 : vector<8x1024xf32>
    %c63 = arith.constant 63 : index
    %249 = memref.load %arg1[%c63] : memref<73xf32, #tpu.memory_space<smem>>
    %250 = vector.broadcast %249 : f32 to vector<8x1024xf32>
    %251 = arith.mulf %180, %250 : vector<8x1024xf32>
    %252 = arith.addf %248, %251 : vector<8x1024xf32>
    %c67 = arith.constant 67 : index
    %253 = memref.load %arg1[%c67] : memref<73xf32, #tpu.memory_space<smem>>
    %254 = vector.broadcast %253 : f32 to vector<8x1024xf32>
    %255 = arith.addf %252, %254 : vector<8x1024xf32>
    %256 = math.tanh %255 : vector<8x1024xf32>
    %c68 = arith.constant 68 : index
    %257 = memref.load %arg1[%c68] : memref<73xf32, #tpu.memory_space<smem>>
    %258 = vector.broadcast %257 : f32 to vector<8x1024xf32>
    %259 = arith.mulf %199, %258 : vector<8x1024xf32>
    %c69 = arith.constant 69 : index
    %260 = memref.load %arg1[%c69] : memref<73xf32, #tpu.memory_space<smem>>
    %261 = vector.broadcast %260 : f32 to vector<8x1024xf32>
    %262 = arith.mulf %218, %261 : vector<8x1024xf32>
    %263 = arith.addf %259, %262 : vector<8x1024xf32>
    %c70 = arith.constant 70 : index
    %264 = memref.load %arg1[%c70] : memref<73xf32, #tpu.memory_space<smem>>
    %265 = vector.broadcast %264 : f32 to vector<8x1024xf32>
    %266 = arith.mulf %237, %265 : vector<8x1024xf32>
    %267 = arith.addf %263, %266 : vector<8x1024xf32>
    %c71 = arith.constant 71 : index
    %268 = memref.load %arg1[%c71] : memref<73xf32, #tpu.memory_space<smem>>
    %269 = vector.broadcast %268 : f32 to vector<8x1024xf32>
    %270 = arith.mulf %256, %269 : vector<8x1024xf32>
    %271 = arith.addf %267, %270 : vector<8x1024xf32>
    %c72 = arith.constant 72 : index
    %272 = memref.load %arg1[%c72] : memref<73xf32, #tpu.memory_space<smem>>
    %273 = vector.broadcast %272 : f32 to vector<8x1024xf32>
    %274 = arith.addf %271, %273 : vector<8x1024xf32>
    %c0_2 = arith.constant 0 : index
    %c0_3 = arith.constant 0 : index
    %275 = vector.load %arg3[%c0_2, %c0_3] : memref<8x1024xf32, #tpu.memory_space<vmem>>, vector<8x1024xf32>
    tpu.vector_store %arg3[%c0_2, %c0_3], %274 {strides = array<i32>} : memref<8x1024xf32, #tpu.memory_space<vmem>>, vector<8x1024xf32>,
    return
  }
  func.func @transform_0(%arg0: i32) -> i32 {
    %c0_i32 = arith.constant 0 : i32
    %c0_i32_0 = arith.constant 0 : i32
    return %c0_i32 : i32
  }
  func.func @transform_1(%arg0: i32) -> (i32, i32) {
    %c0_i32 = arith.constant 0 : i32
    %c0_i32_0 = arith.constant 0 : i32
    return %arg0, %c0_i32 : i32, i32
  }
  func.func @transform_2(%arg0: i32) -> (i32, i32) {
    %c0_i32 = arith.constant 0 : i32
    %c0_i32_0 = arith.constant 0 : i32
    return %arg0, %c0_i32 : i32, i32
  }
}

</mosaic_0001>

<bundles_post_ra>
// kernel: tpu_custom_call.1
= control target key start
LH: loop header
LB: loop body
LE: loop exit
PB: predicated region body
PF: predicated region fallthrough
CT: control target
= control target key end

     0   :  { %7 = vsyncpa [#allocation5], 0  ;;  %s2589_s0 = inlined_call_operand.hbm [shape: f32[73], index: 0, kind: input, shape index: {}]   ;;  %s2590_s1 = inlined_call_operand.hbm [shape: f32[8,1024], index: 1, kind: input, shape index: {}]   ;;  %s2591_s2 = inlined_call_operand.hbm [shape: f32[8,1024], index: 2, kind: output, shape index: {}]  }
   0x1   :  { %8 = vsyncpa [#allocation3], 0 }
   0x2   :  { %9 = vsyncpa [#allocation4], 0  ;;  %s15_s11 = sshll.u32 %s2589_s0, 4  ;;  %s24_s14 = sshll.u32 %s2590_s1, 4  ;;  %s16_s11 = int_to_ptr.hbm [resolvable:$true] %s15_s11  ;;  %s25_s14 = int_to_ptr.hbm [resolvable:$true] %s24_s14 }
   0x3   :  { %s1640_s15 = smov [#allocation2]   ;;  %s1641_s16 = smov [#allocation6]  }
   0x4   :  { %18 = dma.hbm_to_smem %s16_s11, 16, %s1640_s15, [#allocation5]  }
   0x5   :  { %s26_s17 = sshll.u32 %s1641_s16, 4  ;;  %s27_s17 = int_to_ptr.vmem [resolvable:$true] %s26_s17 }
   0x6   :  { %29 = dma.hbm_to_vmem [thread:$0]  %s25_s14, 1024, %s27_s17, [#allocation3]  }
   0x7   :  { %1634 = dma.done.wait [#allocation5], 16  }
   0x8   :  { %1635 = vsyncadd [#allocation5], 4294967280 }
   0x9   :  { %1636 = dma.done.wait [#allocation3], 1024  }
   0xa   :  { %1637 = vsyncadd [#allocation3], 4294966272 }
   0xb   :  { %38 = sfence }
   0xc   :  { %s47_s18 = sld [smem:[#allocation2]]  ;;  %v1664_v0 = vld [vmem:[#allocation6] sm:$0xff]  ;;  %v1666_v1 = vld [vmem:[#allocation6 + $0x8] sm:$0xff]  ;;  %v1668_v2 = vld [vmem:[#allocation6 + $0x10] sm:$0xff] }
   0xd   :  { %s1243_s19 = sld [smem:[#allocation2 + $0x4]]  ;;  %v1670_v3 = vld [vmem:[#allocation6 + $0x18] sm:$0xff]  ;;  %v1672_v4 = vld [vmem:[#allocation6 + $0x20] sm:$0xff]  ;;  %v1674_v5 = vld [vmem:[#allocation6 + $0x28] sm:$0xff] }
   0xe   :  { %s1244_s0 = sld [smem:[#allocation2 + $0x1]]  ;;  %v1676_v6 = vld [vmem:[#allocation6 + $0x30] sm:$0xff]  ;;  %v1678_v7 = vld [vmem:[#allocation6 + $0x38] sm:$0xff] }
   0xf   :  { %s1245_s1 = sld [smem:[#allocation2 + $0x5]] }
  0x10   :  { %s1688_s20 = sld [smem:[#allocation2 + $0x2]] }
  0x11   :  { %s1690_s21 = sld [smem:[#allocation2 + $0x6]] }
  0x12   :  { %v48_v8 = vstv %s47_s18  ;;  %s1700_s22 = sld [smem:[#allocation2 + $0x3]] }
  0x13   :  { %v49_v9 = vmul.f32 %v48_v8, %v1664_v0  ;;  %v50_v10 = vmul.f32 %v48_v8, %v1666_v1  ;;  %v51_v11 = vmul.f32 %v48_v8, %v1668_v2  ;;  %v52_v12 = vmul.f32 %v48_v8, %v1670_v3  ;;  %s1702_s23 = sld [smem:[#allocation2 + $0x7]] }
  0x14   :  { %v53_v13 = vmul.f32 %v48_v8, %v1672_v4  ;;  %v54_v14 = vmul.f32 %v48_v8, %v1674_v5  ;;  %v55_v15 = vmul.f32 %v48_v8, %v1676_v6  ;;  %v56_v16 = vmul.f32 %v48_v8, %v1678_v7  ;;  %s1720_s24 = sld [smem:[#allocation2 + $0x8]] }
  0x15   :  { %v58_v17 = vstv %s1243_s19  ;;  %v76_v18 = vstv %s1244_s0  ;;  %v86_v19 = vstv %s1245_s1  ;;  %s1724_s25 = sld [smem:[#allocation2 + $0xc]] }
  0x16   :  { %v59_v20 = vadd.f32 %v58_v17, %v49_v9  ;;  %v60_v21 = vadd.f32 %v58_v17, %v50_v10  ;;  %v61_v22 = vadd.f32 %v58_v17, %v51_v11  ;;  %v62_v23 = vadd.f32 %v58_v17, %v52_v12  ;;  %s1754_s26 = sld [smem:[#allocation2 + $0x10]] }
  0x17   :  { %v63_v24 = vadd.f32 %v58_v17, %v53_v13  ;;  %v64_v25 = vadd.f32 %v58_v17, %v54_v14  ;;  %v65_v26 = vadd.f32 %v58_v17, %v55_v15  ;;  %v66_v27 = vadd.f32 %v58_v17, %v56_v16  ;;  %s1762_s27 = sld [smem:[#allocation2 + $0x14]] }
  0x18   :  { %1318 = vtanh.f32 %v59_v20  ;;  %v77_v28 = vmul.f32 %v76_v18, %v1664_v0  ;;  %v78_v29 = vmul.f32 %v76_v18, %v1666_v1  ;;  %v79_v30 = vmul.f32 %v76_v18, %v1668_v2  ;;  %s1769_s28 = sld [smem:[#allocation2 + $0x18]] }
  0x19   :  { %1320 = vtanh.f32 %v60_v21  ;;  %v80_v31 = vmul.f32 %v76_v18, %v1670_v3  ;;  %v81_v32 = vmul.f32 %v76_v18, %v1672_v4  ;;  %v82_v33 = vmul.f32 %v76_v18, %v1674_v5  ;;  %s1796_s29 = sld [smem:[#allocation2 + $0x9]] }
  0x1a   :  { %1322 = vtanh.f32 %v61_v22  ;;  %v83_v34 = vmul.f32 %v76_v18, %v1676_v6  ;;  %v84_v35 = vmul.f32 %v76_v18, %v1678_v7  ;;  %v87_v36 = vadd.f32 %v86_v19, %v77_v28  ;;  %s1833_s30 = sld [smem:[#allocation2 + $0xd]] }
  0x1b   :  { %1324 = vtanh.f32 %v62_v23  ;;  %v88_v37 = vadd.f32 %v86_v19, %v78_v29  ;;  %v89_v38 = vadd.f32 %v86_v19, %v79_v30  ;;  %v90_v39 = vadd.f32 %v86_v19, %v80_v31  ;;  %s1862_s3 = sld [smem:[#allocation2 + $0x11]] }
  0x1c   :  { %1326 = vtanh.f32 %v63_v24  ;;  %v91_v40 = vadd.f32 %v86_v19, %v81_v32  ;;  %v92_v41 = vadd.f32 %v86_v19, %v82_v33  ;;  %v93_v42 = vadd.f32 %v86_v19, %v83_v34  ;;  %s1868_s4 = sld [smem:[#allocation2 + $0x15]] }
  0x1d   :  { %1328 = vtanh.f32 %v64_v25  ;;  %v94_v43 = vadd.f32 %v86_v19, %v84_v35  ;;  %v104_v44 = vstv %s1688_s20  ;;  %v114_v45 = vstv %s1690_s21  ;;  %s1873_s5 = sld [smem:[#allocation2 + $0x19]] }
  0x1e   :  { %v1706_v46 = vpop.eup %1318  ;;  %1330 = vtanh.f32 %v65_v26  ;;  %v105_v47 = vmul.f32 %v104_v44, %v1664_v0  ;;  %v106_v48 = vmul.f32 %v104_v44, %v1666_v1  ;;  %v107_v49 = vmul.f32 %v104_v44, %v1668_v2  ;;  %s1878_s6 = sld [smem:[#allocation2 + $0xa]] }
  0x1f   :  { %v1711_v50 = vpop.eup %1320  ;;  %1332 = vtanh.f32 %v66_v27  ;;  %v108_v51 = vmul.f32 %v104_v44, %v1670_v3  ;;  %v109_v52 = vmul.f32 %v104_v44, %v1672_v4  ;;  %v110_v53 = vmul.f32 %v104_v44, %v1674_v5  ;;  %s1883_s7 = sld [smem:[#allocation2 + $0xe]] }
  0x20   :  { %v1716_v54 = vpop.eup %1322  ;;  %1334 = vtanh.f32 %v87_v36  ;;  %v111_v55 = vmul.f32 %v104_v44, %v1676_v6  ;;  %v112_v56 = vmul.f32 %v104_v44, %v1678_v7  ;;  %v115_v57 = vadd.f32 %v114_v45, %v105_v47  ;;  %s1923_s8 = sld [smem:[#allocation2 + $0x12]] }
  0x21   :  { %v1722_v58 = vpop.eup %1324  ;;  %1336 = vtanh.f32 %v88_v37  ;;  %v116_v59 = vadd.f32 %v114_v45, %v106_v48  ;;  %v117_v60 = vadd.f32 %v114_v45, %v107_v49  ;;  %v118_v61 = vadd.f32 %v114_v45, %v108_v51  ;;  %s1925_s9 = sld [smem:[#allocation2 + $0x16]] }
  0x22   :  { %v1726_v62 = vpop.eup %1326  ;;  %1338 = vtanh.f32 %v89_v38  ;;  %v119_v63 = vadd.f32 %v114_v45, %v109_v52  ;;  %v120_v8 = vadd.f32 %v114_v45, %v110_v53  ;;  %v121_v9 = vadd.f32 %v114_v45, %v111_v55  ;;  %s1927_s10 = sld [smem:[#allocation2 + $0x1a]] }
  0x23   :  { %v1728_v10 = vpop.eup %1328  ;;  %1340 = vtanh.f32 %v90_v39  ;;  %v122_v11 = vadd.f32 %v114_v45, %v112_v56  ;;  %v132_v12 = vstv %s1700_s22  ;;  %v142_v13 = vstv %s1702_s23  ;;  %s1932_s11 = sld [smem:[#allocation2 + $0xb]] }
  0x24   :  { %v1732_v14 = vpop.eup %1330  ;;  %1342 = vtanh.f32 %v91_v40  ;;  %v133_v15 = vmul.f32 %v132_v12, %v1664_v0  ;;  %v134_v16 = vmul.f32 %v132_v12, %v1666_v1  ;;  %v135_v17 = vmul.f32 %v132_v12, %v1668_v2  ;;  %s1979_s12 = sld [smem:[#allocation2 + $0xf]] }
  0x25   :  { %v1737_v18 = vpop.eup %1332  ;;  %1344 = vtanh.f32 %v92_v41  ;;  %v136_v19 = vmul.f32 %v132_v12, %v1670_v3  ;;  %v137_v20 = vmul.f32 %v132_v12, %v1672_v4  ;;  %v138_v21 = vmul.f32 %v132_v12, %v1674_v5  ;;  %s1985_s13 = sld [smem:[#allocation2 + $0x13]] }
  0x26   :  { %v1742_v22 = vpop.eup %1334  ;;  %1346 = vtanh.f32 %v93_v42  ;;  %v139_v23 = vmul.f32 %v132_v12, %v1676_v6  ;;  %v140_v0 = vmul.f32 %v132_v12, %v1678_v7  ;;  %v143_v1 = vadd.f32 %v142_v13, %v133_v15  ;;  %s1987_s14 = sld [smem:[#allocation2 + $0x17]] }
  0x27   :  { %v1746_v2 = vpop.eup %1336  ;;  %1348 = vtanh.f32 %v94_v43  ;;  %v144_v24 = vadd.f32 %v142_v13, %v134_v16  ;;  %v145_v25 = vadd.f32 %v142_v13, %v135_v17  ;;  %v146_v3 = vadd.f32 %v142_v13, %v136_v19  ;;  %s1992_s15 = sld [smem:[#allocation2 + $0x1b]] }
  0x28   :  { %v1748_v26 = vpop.eup %1338  ;;  %1350 = vtanh.f32 %v115_v57  ;;  %v147_v4 = vadd.f32 %v142_v13, %v137_v20  ;;  %v1750_v5 = vadd.f32 %v142_v13, %v138_v21  ;;  %v1752_v27 = vadd.f32 %v142_v13, %v139_v23  ;;  %s2023_s16 = sld [smem:[#allocation2 + $0x1c]] }
  0x29   :  { %v1756_v6 = vpop.eup %1340  ;;  %1352 = vtanh.f32 %v116_v59  ;;  %v1758_v7 = vadd.f32 %v142_v13, %v140_v0  ;;  %v160_v28 = vstv %s1720_s24  ;;  %v170_v29 = vstv %s1724_s25  ;;  %s2031_s17 = sld [smem:[#allocation2 + $0x20]] }
  0x2a   :  { %v1764_v30 = vpop.eup %1342  ;;  %1354 = vtanh.f32 %v117_v60  ;;  %v161_v31 = vmul.f32 %v1706_v46, %v160_v28  ;;  %v162_v32 = vmul.f32 %v1711_v50, %v160_v28  ;;  %v163_v33 = vmul.f32 %v1716_v54, %v160_v28  ;;  %s2035_s18 = sld [smem:[#allocation2 + $0x24]] }
  0x2b   :  { %v1771_v34 = vpop.eup %1344  ;;  %1356 = vtanh.f32 %v118_v61  ;;  %v164_v35 = vmul.f32 %v1722_v58, %v160_v28  ;;  %v165_v36 = vmul.f32 %v1726_v62, %v160_v28  ;;  %v166_v37 = vmul.f32 %v1728_v10, %v160_v28  ;;  %s2064_s19 = sld [smem:[#allocation2 + $0x28]] }
  0x2c   :  { %v1776_v38 = vpop.eup %1346  ;;  %1358 = vtanh.f32 %v119_v63  ;;  %v167_v39 = vmul.f32 %v1732_v14, %v160_v28  ;;  %v168_v40 = vmul.f32 %v1737_v18, %v160_v28  ;;  %v171_v41 = vmul.f32 %v1742_v22, %v170_v29  ;;  %s2072_s0 = sld [smem:[#allocation2 + $0x2c]] }
  0x2d   :  { %v1781_v42 = vpop.eup %1348  ;;  %1360 = vtanh.f32 %v120_v8  ;;  %v172_v43 = vmul.f32 %v1746_v2, %v170_v29  ;;  %v173_v44 = vmul.f32 %v1748_v26, %v170_v29  ;;  %v174_v45 = vmul.f32 %v1756_v6, %v170_v29  ;;  %s2076_s1 = sld [smem:[#allocation2 + $0x1d]] }
  0x2e   :  { %v1786_v47 = vpop.eup %1350  ;;  %1362 = vtanh.f32 %v121_v9  ;;  %v175_v48 = vmul.f32 %v1764_v30, %v170_v29  ;;  %v176_v49 = vmul.f32 %v1771_v34, %v170_v29  ;;  %v177_v51 = vmul.f32 %v1776_v38, %v170_v29  ;;  %s2081_s20 = sld [smem:[#allocation2 + $0x21]] }
  0x2f   :  { %v1791_v52 = vpop.eup %1352  ;;  %1364 = vtanh.f32 %v122_v11  ;;  %v178_v53 = vmul.f32 %v1781_v42, %v170_v29  ;;  %v179_v55 = vadd.f32 %v171_v41, %v161_v31  ;;  %v180_v56 = vadd.f32 %v172_v43, %v162_v32  ;;  %s2089_s21 = sld [smem:[#allocation2 + $0x25]] }
  0x30   :  { %v1794_v57 = vpop.eup %1354  ;;  %1366 = vtanh.f32 %v143_v1  ;;  %v181_v59 = vadd.f32 %v173_v44, %v163_v33  ;;  %v182_v60 = vadd.f32 %v174_v45, %v164_v35  ;;  %v183_v61 = vadd.f32 %v175_v48, %v165_v36  ;;  %s2121_s22 = sld [smem:[#allocation2 + $0x29]] }
  0x31   :  { %v1798_v63 = vpop.eup %1356  ;;  %1368 = vtanh.f32 %v144_v24  ;;  %v184_v8 = vadd.f32 %v176_v49, %v166_v37  ;;  %v185_v9 = vadd.f32 %v177_v51, %v167_v39  ;;  %v186_v11 = vadd.f32 %v178_v53, %v168_v40  ;;  %s2126_s23 = sld [smem:[#allocation2 + $0x2d]] }
  0x32   :  { %v1800_v12 = vpop.eup %1358  ;;  %1370 = vtanh.f32 %v145_v25  ;;  %v188_v13 = vstv %s1754_s26  ;;  %v206_v15 = vstv %s1762_s27  ;;  %v1805_v16 = vstv %s1769_s28  ;;  %s2131_s24 = sld [smem:[#allocation2 + $0x1e]] }
  0x33   :  { %v1807_v17 = vpop.eup %1360  ;;  %1372 = vtanh.f32 %v146_v3  ;;  %v189_v19 = vmul.f32 %v1786_v47, %v188_v13  ;;  %v190_v20 = vmul.f32 %v1791_v52, %v188_v13  ;;  %v191_v21 = vmul.f32 %v1794_v57, %v188_v13  ;;  %s2136_s25 = sld [smem:[#allocation2 + $0x22]] }
  0x34   :  { %v1812_v23 = vpop.eup %1362  ;;  %1374 = vtanh.f32 %v147_v4  ;;  %v192_v0 = vmul.f32 %v1798_v63, %v188_v13  ;;  %v193_v1 = vmul.f32 %v1800_v12, %v188_v13  ;;  %v194_v24 = vmul.f32 %v1807_v17, %v188_v13  ;;  %s2175_s26 = sld [smem:[#allocation2 + $0x26]] }
  0x35   :  { %v1817_v25 = vpop.eup %1364  ;;  %1376 = vtanh.f32 %v1750_v5  ;;  %v195_v3 = vmul.f32 %v1812_v23, %v188_v13  ;;  %v197_v28 = vadd.f32 %v189_v19, %v179_v55  ;;  %v198_v29 = vadd.f32 %v190_v20, %v180_v56  ;;  %s2177_s27 = sld [smem:[#allocation2 + $0x2a]] }
  0x36   :  { %v1821_v31 = vpop.eup %1366  ;;  %1378 = vtanh.f32 %v1752_v27  ;;  %v196_v4 = vmul.f32 %v1817_v25, %v188_v13  ;;  %v199_v32 = vadd.f32 %v191_v21, %v181_v59  ;;  %v200_v33 = vadd.f32 %v192_v0, %v182_v60  ;;  %s2179_s28 = sld [smem:[#allocation2 + $0x2e]] }
  0x37   :  { %v1825_v35 = vpop.eup %1368  ;;  %1380 = vtanh.f32 %v1758_v7  ;;  %v201_v36 = vadd.f32 %v193_v1, %v183_v61  ;;  %v202_v37 = vadd.f32 %v194_v24, %v184_v8  ;;  %v203_v5 = vadd.f32 %v195_v3, %v185_v9 }
  0x38   :  { %v1828_v39 = vpop.eup %1370  ;;  %v204_v40 = vadd.f32 %v196_v4, %v186_v11  ;;  %v207_v41 = vmul.f32 %v1821_v31, %v206_v15  ;;  %v208_v43 = vmul.f32 %v1825_v35, %v206_v15  ;;  %v242_v44 = vstv %s1796_s29  ;;  %s2184_s29 = sld [smem:[#allocation2 + $0x1f]] }
  0x39   :  { %v1835_v27 = vpop.eup %1372  ;;  %v209_v45 = vmul.f32 %v1828_v39, %v206_v15  ;;  %v243_v48 = vmul.f32 %v1706_v46, %v242_v44  ;;  %v244_v7 = vmul.f32 %v1711_v50, %v242_v44  ;;  %v245_v49 = vmul.f32 %v1716_v54, %v242_v44 }
  0x3a   :  { %v1841_v51 = vpop.eup %1374  ;;  %v210_v53 = vmul.f32 %v1835_v27, %v206_v15  ;;  %v215_v55 = vadd.f32 %v207_v41, %v197_v28  ;;  %v216_v56 = vadd.f32 %v208_v43, %v198_v29  ;;  %v246_v59 = vmul.f32 %v1722_v58, %v242_v44 }
  0x3b   :  { %2646 = vst [vmem:[#allocation11_spill] sm:$0xff] %v1841_v51  ;;  %v1845_v60 = vpop.eup %1376  ;;  %v211_v61 = vmul.f32 %v1841_v51, %v206_v15  ;;  %v217_v8 = vadd.f32 %v209_v45, %v199_v32  ;;  %v247_v9 = vmul.f32 %v1726_v62, %v242_v44  ;;  %v248_v11 = vmul.f32 %v1728_v10, %v242_v44 }
  0x3c   :  { %2647 = vst [vmem:[#allocation12_spill] sm:$0xff] %v1845_v60  ;;  %v1850_v13 = vpop.eup %1378  ;;  %v212_v19 = vmul.f32 %v1845_v60, %v206_v15  ;;  %v218_v20 = vadd.f32 %v210_v53, %v200_v33  ;;  %v225_v21 = vadd.f32 %v1805_v16, %v215_v55  ;;  %v226_v0 = vadd.f32 %v1805_v16, %v216_v56 }
  0x3d   :  { %2648 = vst [vmem:[#allocation13_spill] sm:$0xff] %v1850_v13  ;;  %v1855_v1 = vpop.eup %1380  ;;  %v213_v24 = vmul.f32 %v1850_v13, %v206_v15  ;;  %v219_v3 = vadd.f32 %v211_v61, %v201_v36  ;;  %v227_v28 = vadd.f32 %v1805_v16, %v217_v8  ;;  %v249_v29 = vmul.f32 %v1732_v14, %v242_v44 }
  0x3e   :  { %v214_v4 = vmul.f32 %v1855_v1, %v206_v15  ;;  %v220_v32 = vadd.f32 %v212_v19, %v202_v37  ;;  %v228_v41 = vadd.f32 %v1805_v16, %v218_v20  ;;  %1382 = vtanh.f32 %v225_v21 }
  0x3f   :  { %v221_v33 = vadd.f32 %v213_v24, %v203_v5  ;;  %v229_v43 = vadd.f32 %v1805_v16, %v219_v3  ;;  %1384 = vtanh.f32 %v226_v0  ;;  %v250_v45 = vmul.f32 %v1737_v18, %v242_v44 }
  0x40   :  { %v222_v53 = vadd.f32 %v214_v4, %v204_v40  ;;  %v230_v36 = vadd.f32 %v1805_v16, %v220_v32  ;;  %1386 = vtanh.f32 %v227_v28  ;;  %v252_v55 = vstv %s1833_s30  ;;  %s2231_s30 = sld [smem:[#allocation2 + $0x23]] }
  0x41   :  { %v231_v15 = vadd.f32 %v1805_v16, %v221_v33  ;;  %1388 = vtanh.f32 %v228_v41  ;;  %v253_v37 = vmul.f32 %v1742_v22, %v252_v55  ;;  %v254_v56 = vmul.f32 %v1746_v2, %v252_v55 }
  0x42   :  { %v232_v5 = vadd.f32 %v1805_v16, %v222_v53  ;;  %1390 = vtanh.f32 %v229_v43  ;;  %v255_v40 = vmul.f32 %v1748_v26, %v252_v55  ;;  %v256_v44 = vmul.f32 %v1756_v6, %v252_v55 }
  0x43   :  { %1392 = vtanh.f32 %v230_v36  ;;  %v257_v61 = vmul.f32 %v1764_v30, %v252_v55  ;;  %v258_v8 = vmul.f32 %v1771_v34, %v252_v55  ;;  %v259_v19 = vmul.f32 %v1776_v38, %v252_v55 }
  0x44   :  { %v1885_v20 = vpop.eup %1382  ;;  %1394 = vtanh.f32 %v231_v15  ;;  %v260_v16 = vmul.f32 %v1781_v42, %v252_v55  ;;  %v261_v21 = vadd.f32 %v253_v37, %v243_v48  ;;  %v262_v0 = vadd.f32 %v254_v56, %v244_v7 }
  0x45   :  { %2649 = vst [vmem:[#allocation14_spill] sm:$0xff] %v1885_v20  ;;  %v1888_v24 = vpop.eup %1384  ;;  %1396 = vtanh.f32 %v232_v5  ;;  %v263_v3 = vadd.f32 %v255_v40, %v245_v49  ;;  %v264_v28 = vadd.f32 %v256_v44, %v246_v59  ;;  %v265_v4 = vadd.f32 %v257_v61, %v247_v9 }
  0x46   :  { %2650 = vst [vmem:[#allocation15_spill] sm:$0xff] %v1888_v24  ;;  %v1890_v32 = vpop.eup %1386  ;;  %v266_v41 = vadd.f32 %v258_v8, %v248_v11  ;;  %v267_v33 = vadd.f32 %v259_v19, %v249_v29  ;;  %v268_v43 = vadd.f32 %v260_v16, %v250_v45  ;;  %v270_v53 = vstv %s1862_s3  ;;  %s2237_s3 = sld [smem:[#allocation2 + $0x27]] }
  0x47   :  { %2651 = vst [vmem:[#allocation16_spill] sm:$0xff] %v1890_v32  ;;  %v1893_v36 = vpop.eup %1388  ;;  %v271_v15 = vmul.f32 %v1786_v47, %v270_v53  ;;  %v272_v55 = vmul.f32 %v1791_v52, %v270_v53  ;;  %v273_v48 = vmul.f32 %v1794_v57, %v270_v53  ;;  %v274_v7 = vmul.f32 %v1798_v63, %v270_v53 }
  0x48   :  { %2652 = vst [vmem:[#allocation17_spill] sm:$0xff] %v1893_v36  ;;  %v1899_v37 = vpop.eup %1390  ;;  %v275_v49 = vmul.f32 %v1800_v12, %v270_v53  ;;  %v276_v59 = vmul.f32 %v1807_v17, %v270_v53  ;;  %v277_v9 = vmul.f32 %v1812_v23, %v270_v53  ;;  %v278_v11 = vmul.f32 %v1817_v25, %v270_v53 }
  0x49   :  { %2653 = vst [vmem:[#allocation18_spill] sm:$0xff] %v1899_v37  ;;  %v1905_v29 = vpop.eup %1392  ;;  %v279_v45 = vadd.f32 %v271_v15, %v261_v21  ;;  %v280_v56 = vadd.f32 %v272_v55, %v262_v0  ;;  %v281_v5 = vadd.f32 %v273_v48, %v263_v3  ;;  %v282_v40 = vadd.f32 %v274_v7, %v264_v28 }
  0x4a   :  { %2654 = vst [vmem:[#allocation19_spill] sm:$0xff] %v1905_v29  ;;  %v1907_v44 = vpop.eup %1394  ;;  %v283_v61 = vadd.f32 %v275_v49, %v265_v4  ;;  %v284_v8 = vadd.f32 %v276_v59, %v266_v41  ;;  %v285_v19 = vadd.f32 %v277_v9, %v267_v33  ;;  %v286_v16 = vadd.f32 %v278_v11, %v268_v43 }
  0x4b   :  { %2655 = vst [vmem:[#allocation20_spill] sm:$0xff] %v1907_v44  ;;  %v1909_v37 = vpop.eup %1396  ;;  %v288_v36 = vstv %s1868_s4  ;;  %v306_v32 = vstv %s1873_s5  ;;  %v324_v24 = vstv %s1878_s6  ;;  %v334_v20 = vstv %s1883_s7  ;;  %s2239_s4 = sld [smem:[#allocation2 + $0x2b]] }
  0x4c   :  { %2656 = vst [vmem:[#allocation21_spill] sm:$0xff] %v1909_v37  ;;  %v289_v53 = vmul.f32 %v1821_v31, %v288_v36  ;;  %v290_v29 = vmul.f32 %v1825_v35, %v288_v36  ;;  %v291_v21 = vmul.f32 %v1828_v39, %v288_v36  ;;  %v292_v0 = vmul.f32 %v1835_v27, %v288_v36  ;;  %s2244_s5 = sld [smem:[#allocation2 + $0x2f]] }
  0x4d   :  { %v293_v3 = vmul.f32 %v1841_v51, %v288_v36  ;;  %v294_v28 = vmul.f32 %v1845_v60, %v288_v36  ;;  %v295_v4 = vmul.f32 %v1850_v13, %v288_v36  ;;  %v296_v41 = vmul.f32 %v1855_v1, %v288_v36  ;;  %s2275_s6 = sld [smem:[#allocation2 + $0x30]] }
  0x4e   :  { %v297_v33 = vadd.f32 %v289_v53, %v279_v45  ;;  %v298_v43 = vadd.f32 %v290_v29, %v280_v56  ;;  %v299_v15 = vadd.f32 %v291_v21, %v281_v5  ;;  %v300_v55 = vadd.f32 %v292_v0, %v282_v40  ;;  %s2283_s7 = sld [smem:[#allocation2 + $0x34]] }
  0x4f   :  { %v301_v48 = vadd.f32 %v293_v3, %v283_v61  ;;  %v302_v7 = vadd.f32 %v294_v28, %v284_v8  ;;  %v303_v49 = vadd.f32 %v295_v4, %v285_v19  ;;  %v304_v59 = vadd.f32 %v296_v41, %v286_v16 }
  0x50   :  { %v307_v9 = vadd.f32 %v306_v32, %v297_v33  ;;  %v308_v11 = vadd.f32 %v306_v32, %v298_v43  ;;  %v309_v37 = vadd.f32 %v306_v32, %v299_v15  ;;  %v310_v44 = vadd.f32 %v306_v32, %v300_v55 }
  0x51   :  { %v311_v60 = vadd.f32 %v306_v32, %v301_v48  ;;  %v312_v13 = vadd.f32 %v306_v32, %v302_v7  ;;  %v313_v51 = vadd.f32 %v306_v32, %v303_v49  ;;  %v314_v36 = vadd.f32 %v306_v32, %v304_v59 }
  0x52   :  { %1398 = vtanh.f32 %v307_v9  ;;  %v325_v29 = vmul.f32 %v1706_v46, %v324_v24  ;;  %v326_v45 = vmul.f32 %v1711_v50, %v324_v24  ;;  %v327_v56 = vmul.f32 %v1716_v54, %v324_v24 }
  0x53   :  { %1400 = vtanh.f32 %v308_v11  ;;  %v328_v5 = vmul.f32 %v1722_v58, %v324_v24  ;;  %v329_v40 = vmul.f32 %v1726_v62, %v324_v24  ;;  %v330_v61 = vmul.f32 %v1728_v10, %v324_v24 }
  0x54   :  { %1402 = vtanh.f32 %v309_v37  ;;  %v331_v32 = vmul.f32 %v1732_v14, %v324_v24  ;;  %v332_v8 = vmul.f32 %v1737_v18, %v324_v24  ;;  %v335_v19 = vmul.f32 %v1742_v22, %v334_v20 }
  0x55   :  { %1404 = vtanh.f32 %v310_v44  ;;  %v336_v16 = vmul.f32 %v1746_v2, %v334_v20  ;;  %v337_v53 = vmul.f32 %v1748_v26, %v334_v20  ;;  %v338_v21 = vmul.f32 %v1756_v6, %v334_v20 }
  0x56   :  { %1406 = vtanh.f32 %v311_v60  ;;  %v339_v0 = vmul.f32 %v1764_v30, %v334_v20  ;;  %v340_v3 = vmul.f32 %v1771_v34, %v334_v20  ;;  %v341_v37 = vmul.f32 %v1776_v38, %v334_v20 }
  0x57   :  { %1408 = vtanh.f32 %v312_v13  ;;  %v342_v24 = vmul.f32 %v1781_v42, %v334_v20  ;;  %v343_v44 = vadd.f32 %v335_v19, %v325_v29  ;;  %v344_v28 = vadd.f32 %v336_v16, %v326_v45 }
  0x58   :  { %v1947_v4 = vpop.eup %1398  ;;  %1410 = vtanh.f32 %v313_v51  ;;  %v345_v41 = vadd.f32 %v337_v53, %v327_v56  ;;  %v346_v60 = vadd.f32 %v338_v21, %v328_v5  ;;  %v347_v33 = vadd.f32 %v339_v0, %v329_v40 }
  0x59   :  { %2657 = vst [vmem:[#allocation22_spill] sm:$0xff] %v1947_v4  ;;  %v1949_v43 = vpop.eup %1400  ;;  %1412 = vtanh.f32 %v314_v36  ;;  %v348_v15 = vadd.f32 %v340_v3, %v330_v61  ;;  %v349_v55 = vadd.f32 %v341_v37, %v331_v32  ;;  %v350_v48 = vadd.f32 %v342_v24, %v332_v8 }
  0x5a   :  { %2658 = vst [vmem:[#allocation23_spill] sm:$0xff] %v1949_v43  ;;  %v1951_v13 = vpop.eup %1402  ;;  %v352_v7 = vstv %s1923_s8  ;;  %v370_v20 = vstv %s1925_s9  ;;  %v388_v49 = vstv %s1927_s10  ;;  %v406_v59 = vstv %s1932_s11  ;;  %s2287_s8 = sld [smem:[#allocation2 + $0x38]] }
  0x5b   :  { %2659 = vst [vmem:[#allocation24_spill] sm:$0xff] %v1951_v13  ;;  %v1957_v9 = vpop.eup %1404  ;;  %v353_v11 = vmul.f32 %v1786_v47, %v352_v7  ;;  %v354_v51 = vmul.f32 %v1791_v52, %v352_v7  ;;  %v355_v29 = vmul.f32 %v1794_v57, %v352_v7  ;;  %v356_v45 = vmul.f32 %v1798_v63, %v352_v7  ;;  %s2316_s9 = sld [smem:[#allocation2 + $0x3c]] }
  0x5c   :  { %2660 = vst [vmem:[#allocation25_spill] sm:$0xff] %v1957_v9  ;;  %v1963_v36 = vpop.eup %1406  ;;  %v357_v56 = vmul.f32 %v1800_v12, %v352_v7  ;;  %v358_v5 = vmul.f32 %v1807_v17, %v352_v7  ;;  %v359_v40 = vmul.f32 %v1812_v23, %v352_v7  ;;  %v360_v61 = vmul.f32 %v1817_v25, %v352_v7  ;;  %s2324_s10 = sld [smem:[#allocation2 + $0x31]] }
  0x5d   :  { %2661 = vst [vmem:[#allocation26_spill] sm:$0xff] %v1963_v36  ;;  %v1969_v32 = vpop.eup %1408  ;;  %v361_v8 = vadd.f32 %v353_v11, %v343_v44  ;;  %v362_v19 = vadd.f32 %v354_v51, %v344_v28  ;;  %v363_v16 = vadd.f32 %v355_v29, %v345_v41  ;;  %v364_v53 = vadd.f32 %v356_v45, %v346_v60  ;;  %v2665_v44 = vld [vmem:[#allocation11_spill] sm:$0xff]  ;;  %v2666_v41 = vld [vmem:[#allocation12_spill] sm:$0xff]  ;;  %s2328_s11 = sld [smem:[#allocation2 + $0x40]] }
  0x5e   :  { %2662 = vst [vmem:[#allocation27_spill] sm:$0xff] %v1969_v32  ;;  %v1971_v21 = vpop.eup %1410  ;;  %v365_v0 = vadd.f32 %v357_v56, %v347_v33  ;;  %v366_v3 = vadd.f32 %v358_v5, %v348_v15  ;;  %v367_v37 = vadd.f32 %v359_v40, %v349_v55  ;;  %v368_v24 = vadd.f32 %v360_v61, %v350_v48  ;;  %v2667_v33 = vld [vmem:[#allocation13_spill] sm:$0xff] }
  0x5f   :  { %2663 = vst [vmem:[#allocation28_spill] sm:$0xff] %v1971_v21  ;;  %v1973_v36 = vpop.eup %1412  ;;  %v371_v9 = vmul.f32 %v1821_v31, %v370_v20  ;;  %v372_v13 = vmul.f32 %v1825_v35, %v370_v20  ;;  %v373_v7 = vmul.f32 %v1828_v39, %v370_v20  ;;  %v374_v32 = vmul.f32 %v1835_v27, %v370_v20 }
  0x60   :  { %2664 = vst [vmem:[#allocation29_spill] sm:$0xff] %v1973_v36  ;;  %v375_v28 = vmul.f32 %v2665_v44, %v370_v20  ;;  %v376_v60 = vmul.f32 %v2666_v41, %v370_v20  ;;  %v377_v15 = vmul.f32 %v2667_v33, %v370_v20  ;;  %v378_v55 = vmul.f32 %v1855_v1, %v370_v20 }
  0x61   :  { %v379_v48 = vadd.f32 %v371_v9, %v361_v8  ;;  %v380_v11 = vadd.f32 %v372_v13, %v362_v19  ;;  %v381_v51 = vadd.f32 %v373_v7, %v363_v16  ;;  %v382_v29 = vadd.f32 %v374_v32, %v364_v53 }
  0x62   :  { %v383_v45 = vadd.f32 %v375_v28, %v365_v0  ;;  %v384_v56 = vadd.f32 %v376_v60, %v366_v3  ;;  %v385_v5 = vadd.f32 %v377_v15, %v367_v37  ;;  %v386_v40 = vadd.f32 %v378_v55, %v368_v24 }
  0x63   :  { %v389_v61 = vadd.f32 %v388_v49, %v379_v48  ;;  %v390_v36 = vadd.f32 %v388_v49, %v380_v11  ;;  %v391_v21 = vadd.f32 %v388_v49, %v381_v51  ;;  %v392_v43 = vadd.f32 %v388_v49, %v382_v29 }
  0x64   :  { %v393_v4 = vadd.f32 %v388_v49, %v383_v45  ;;  %v394_v41 = vadd.f32 %v388_v49, %v384_v56  ;;  %v395_v33 = vadd.f32 %v388_v49, %v385_v5  ;;  %v396_v44 = vadd.f32 %v388_v49, %v386_v40  ;;  %v2668_v5 = vld [vmem:[#allocation11_spill] sm:$0xff] }
  0x65   :  { %1414 = vtanh.f32 %v389_v61  ;;  %v407_v13 = vmul.f32 %v1706_v46, %v406_v59  ;;  %v408_v20 = vmul.f32 %v1711_v50, %v406_v59  ;;  %v409_v9 = vmul.f32 %v1716_v54, %v406_v59  ;;  %v2669_v61 = vld [vmem:[#allocation12_spill] sm:$0xff] }
  0x66   :  { %1416 = vtanh.f32 %v390_v36  ;;  %v410_v32 = vmul.f32 %v1722_v58, %v406_v59  ;;  %v411_v8 = vmul.f32 %v1726_v62, %v406_v59  ;;  %v412_v19 = vmul.f32 %v1728_v10, %v406_v59 }
  0x67   :  { %1418 = vtanh.f32 %v391_v21  ;;  %v413_v49 = vmul.f32 %v1732_v14, %v406_v59  ;;  %v414_v16 = vmul.f32 %v1737_v18, %v406_v59  ;;  %v416_v53 = vstv %s1979_s12  ;;  %s2333_s12 = sld [smem:[#allocation2 + $0x35]] }
  0x68   :  { %1420 = vtanh.f32 %v392_v43  ;;  %v417_v46 = vmul.f32 %v1742_v22, %v416_v53  ;;  %v418_v50 = vmul.f32 %v1746_v2, %v416_v53  ;;  %v419_v54 = vmul.f32 %v1748_v26, %v416_v53 }
  0x69   :  { %1422 = vtanh.f32 %v393_v4  ;;  %v420_v58 = vmul.f32 %v1756_v6, %v416_v53  ;;  %v421_v62 = vmul.f32 %v1764_v30, %v416_v53  ;;  %v422_v10 = vmul.f32 %v1771_v34, %v416_v53 }
  0x6a   :  { %1424 = vtanh.f32 %v394_v41  ;;  %v423_v14 = vmul.f32 %v1776_v38, %v416_v53  ;;  %v424_v18 = vmul.f32 %v1781_v42, %v416_v53  ;;  %v425_v22 = vadd.f32 %v417_v46, %v407_v13 }
  0x6b   :  { %v2008_v43 = vpop.eup %1414  ;;  %1426 = vtanh.f32 %v395_v33  ;;  %v426_v2 = vadd.f32 %v418_v50, %v408_v20  ;;  %v427_v26 = vadd.f32 %v419_v54, %v409_v9  ;;  %v428_v4 = vadd.f32 %v420_v58, %v410_v32  ;;  %v2670_v20 = vld [vmem:[#allocation13_spill] sm:$0xff] }
  0x6c   :  { %v2010_v6 = vpop.eup %1416  ;;  %1428 = vtanh.f32 %v396_v44  ;;  %v429_v30 = vadd.f32 %v421_v62, %v411_v8  ;;  %v430_v34 = vadd.f32 %v422_v10, %v412_v19  ;;  %v431_v59 = vadd.f32 %v423_v14, %v413_v49 }
  0x6d   :  { %v2012_v36 = vpop.eup %1418  ;;  %v432_v38 = vadd.f32 %v424_v18, %v414_v16  ;;  %v434_v21 = vstv %s1985_s13  ;;  %v452_v0 = vstv %s1987_s14  ;;  %v470_v42 = vstv %s1992_s15  ;;  %s2341_s13 = sld [smem:[#allocation2 + $0x39]] }
  0x6e   :  { %v2017_v3 = vpop.eup %1420  ;;  %v435_v37 = vmul.f32 %v1786_v47, %v434_v21  ;;  %v436_v24 = vmul.f32 %v1791_v52, %v434_v21  ;;  %v437_v7 = vmul.f32 %v1794_v57, %v434_v21  ;;  %v438_v28 = vmul.f32 %v1798_v63, %v434_v21  ;;  %s2373_s14 = sld [smem:[#allocation2 + $0x3d]] }
  0x6f   :  { %v2025_v44 = vpop.eup %1422  ;;  %v439_v41 = vmul.f32 %v1800_v12, %v434_v21  ;;  %v440_v60 = vmul.f32 %v1807_v17, %v434_v21  ;;  %v441_v33 = vmul.f32 %v1812_v23, %v434_v21  ;;  %v442_v15 = vmul.f32 %v1817_v25, %v434_v21  ;;  %s2378_s15 = sld [smem:[#allocation2 + $0x41]] }
  0x70   :  { %v2033_v47 = vpop.eup %1424  ;;  %v443_v52 = vadd.f32 %v435_v37, %v425_v22  ;;  %v444_v57 = vadd.f32 %v436_v24, %v426_v2  ;;  %v445_v55 = vadd.f32 %v437_v7, %v427_v26  ;;  %v446_v63 = vadd.f32 %v438_v28, %v428_v4  ;;  %v2671_v2 = vld [vmem:[#allocation14_spill] sm:$0xff]  ;;  %v2672_v4 = vld [vmem:[#allocation15_spill] sm:$0xff] }
  0x71   :  { %v2037_v48 = vpop.eup %1426  ;;  %v447_v11 = vadd.f32 %v439_v41, %v429_v30  ;;  %v448_v12 = vadd.f32 %v440_v60, %v430_v34  ;;  %v449_v51 = vadd.f32 %v441_v33, %v431_v59  ;;  %v450_v17 = vadd.f32 %v442_v15, %v432_v38  ;;  %v2673_v34 = vld [vmem:[#allocation16_spill] sm:$0xff]  ;;  %v2674_v38 = vld [vmem:[#allocation17_spill] sm:$0xff]  ;;  %v2676_v24 = vld [vmem:[#allocation19_spill] sm:$0xff] }
  0x72   :  { %v2039_v29 = vpop.eup %1428  ;;  %v453_v23 = vmul.f32 %v1821_v31, %v452_v0  ;;  %v454_v25 = vmul.f32 %v1825_v35, %v452_v0  ;;  %v455_v45 = vmul.f32 %v1828_v39, %v452_v0  ;;  %v456_v56 = vmul.f32 %v1835_v27, %v452_v0  ;;  %v2678_v41 = vld [vmem:[#allocation21_spill] sm:$0xff]  ;;  %v2679_v33 = vld [vmem:[#allocation22_spill] sm:$0xff] }
  0x73   :  { %v457_v40 = vmul.f32 %v2668_v5, %v452_v0  ;;  %v458_v13 = vmul.f32 %v2669_v61, %v452_v0  ;;  %v459_v9 = vmul.f32 %v2670_v20, %v452_v0  ;;  %v460_v32 = vmul.f32 %v1855_v1, %v452_v0  ;;  %v2675_v0 = vld [vmem:[#allocation18_spill] sm:$0xff] }
  0x74   :  { %v461_v8 = vadd.f32 %v453_v23, %v443_v52  ;;  %v462_v19 = vadd.f32 %v454_v25, %v444_v57  ;;  %v463_v49 = vadd.f32 %v455_v45, %v445_v55  ;;  %v464_v31 = vadd.f32 %v456_v56, %v446_v63  ;;  %v2680_v52 = vld [vmem:[#allocation23_spill] sm:$0xff]  ;;  %v2681_v55 = vld [vmem:[#allocation24_spill] sm:$0xff] }
  0x75   :  { %v465_v35 = vadd.f32 %v457_v40, %v447_v11  ;;  %v466_v16 = vadd.f32 %v458_v13, %v448_v12  ;;  %v467_v39 = vadd.f32 %v459_v9, %v449_v51  ;;  %v468_v53 = vadd.f32 %v460_v32, %v450_v17  ;;  %v2682_v11 = vld [vmem:[#allocation25_spill] sm:$0xff]  ;;  %v2683_v51 = vld [vmem:[#allocation26_spill] sm:$0xff]  ;;  %v2684_v23 = vld [vmem:[#allocation27_spill] sm:$0xff] }
  0x76   :  { %v471_v27 = vadd.f32 %v470_v42, %v461_v8  ;;  %v472_v46 = vadd.f32 %v470_v42, %v462_v19  ;;  %v473_v50 = vadd.f32 %v470_v42, %v463_v49  ;;  %v474_v54 = vadd.f32 %v470_v42, %v464_v31  ;;  %v2685_v45 = vld [vmem:[#allocation28_spill] sm:$0xff]  ;;  %v2686_v40 = vld [vmem:[#allocation29_spill] sm:$0xff] }
  0x77   :  { %v475_v58 = vadd.f32 %v470_v42, %v465_v35  ;;  %v476_v62 = vadd.f32 %v470_v42, %v466_v16  ;;  %v477_v10 = vadd.f32 %v470_v42, %v467_v39  ;;  %v478_v14 = vadd.f32 %v470_v42, %v468_v53  ;;  %v2677_v42 = vld [vmem:[#allocation20_spill] sm:$0xff] }
  0x78   :  { %1430 = vtanh.f32 %v471_v27  ;;  %v488_v1 = vstv %s2023_s16  ;;  %v498_v18 = vstv %s2031_s17  ;;  %v516_v22 = vstv %s2035_s18  ;;  %s2383_s16 = sld [smem:[#allocation2 + $0x32]] }
  0x79   :  { %1432 = vtanh.f32 %v472_v46  ;;  %v489_v26 = vmul.f32 %v2671_v2, %v488_v1  ;;  %v490_v30 = vmul.f32 %v2672_v4, %v488_v1  ;;  %v491_v59 = vmul.f32 %v2673_v34, %v488_v1  ;;  %s2388_s17 = sld [smem:[#allocation2 + $0x36]] }
  0x7a   :  { %1434 = vtanh.f32 %v473_v50  ;;  %v492_v21 = vmul.f32 %v2674_v38, %v488_v1  ;;  %v493_v37 = vmul.f32 %v2675_v0, %v488_v1  ;;  %v494_v7 = vmul.f32 %v2676_v24, %v488_v1  ;;  %s2427_s18 = sld [smem:[#allocation2 + $0x3a]] }
  0x7b   :  { %1436 = vtanh.f32 %v474_v54  ;;  %v495_v28 = vmul.f32 %v2677_v42, %v488_v1  ;;  %v496_v60 = vmul.f32 %v2678_v41, %v488_v1  ;;  %v499_v15 = vmul.f32 %v2679_v33, %v498_v18 }
  0x7c   :  { %1438 = vtanh.f32 %v475_v58  ;;  %v500_v57 = vmul.f32 %v2680_v52, %v498_v18  ;;  %v501_v63 = vmul.f32 %v2681_v55, %v498_v18  ;;  %v502_v12 = vmul.f32 %v2682_v11, %v498_v18 }
  0x7d   :  { %1440 = vtanh.f32 %v476_v62  ;;  %v503_v17 = vmul.f32 %v2683_v51, %v498_v18  ;;  %v504_v25 = vmul.f32 %v2684_v23, %v498_v18  ;;  %v505_v56 = vmul.f32 %v2685_v45, %v498_v18 }
  0x7e   :  { %v2069_v5 = vpop.eup %1430  ;;  %1442 = vtanh.f32 %v477_v10  ;;  %v506_v61 = vmul.f32 %v2686_v40, %v498_v18  ;;  %v507_v13 = vadd.f32 %v499_v15, %v489_v26  ;;  %v508_v20 = vadd.f32 %v500_v57, %v490_v30 }
  0x7f   :  { %v2074_v9 = vpop.eup %1432  ;;  %1444 = vtanh.f32 %v478_v14  ;;  %v509_v32 = vadd.f32 %v501_v63, %v491_v59  ;;  %v510_v8 = vadd.f32 %v502_v12, %v492_v21  ;;  %v511_v19 = vadd.f32 %v503_v17, %v493_v37 }
  0x80   :  { %v2078_v49 = vpop.eup %1434  ;;  %v512_v31 = vadd.f32 %v504_v25, %v494_v7  ;;  %v513_v35 = vadd.f32 %v505_v56, %v495_v28  ;;  %v514_v16 = vadd.f32 %v506_v61, %v496_v60  ;;  %v517_v39 = vmul.f32 %v2008_v43, %v516_v22 }
  0x81   :  { %v2083_v53 = vpop.eup %1436  ;;  %v518_v27 = vmul.f32 %v2010_v6, %v516_v22  ;;  %v519_v46 = vmul.f32 %v2012_v36, %v516_v22  ;;  %v520_v50 = vmul.f32 %v2017_v3, %v516_v22  ;;  %v521_v54 = vmul.f32 %v2025_v44, %v516_v22 }
  0x82   :  { %2687 = vst [vmem:[#allocation11_spill] sm:$0xff] %v2083_v53  ;;  %v2091_v58 = vpop.eup %1438  ;;  %v522_v62 = vmul.f32 %v2033_v47, %v516_v22  ;;  %v523_v10 = vmul.f32 %v2037_v48, %v516_v22  ;;  %v524_v14 = vmul.f32 %v2039_v29, %v516_v22  ;;  %v525_v1 = vadd.f32 %v517_v39, %v507_v13 }
  0x83   :  { %2688 = vst [vmem:[#allocation12_spill] sm:$0xff] %v2091_v58  ;;  %v2096_v18 = vpop.eup %1440  ;;  %v526_v26 = vadd.f32 %v518_v27, %v508_v20  ;;  %v527_v30 = vadd.f32 %v519_v46, %v509_v32  ;;  %v528_v59 = vadd.f32 %v520_v50, %v510_v8  ;;  %v529_v21 = vadd.f32 %v521_v54, %v511_v19 }
  0x84   :  { %2689 = vst [vmem:[#allocation13_spill] sm:$0xff] %v2096_v18  ;;  %v2098_v37 = vpop.eup %1442  ;;  %v530_v7 = vadd.f32 %v522_v62, %v512_v31  ;;  %v531_v28 = vadd.f32 %v523_v10, %v513_v35  ;;  %v532_v60 = vadd.f32 %v524_v14, %v514_v16  ;;  %v534_v15 = vstv %s2064_s19  ;;  %s2429_s19 = sld [smem:[#allocation2 + $0x3e]] }
  0x85   :  { %2690 = vst [vmem:[#allocation14_spill] sm:$0xff] %v2098_v37  ;;  %v2101_v57 = vpop.eup %1444  ;;  %v535_v63 = vmul.f32 %v2069_v5, %v534_v15  ;;  %v536_v22 = vmul.f32 %v2074_v9, %v534_v15  ;;  %v537_v12 = vmul.f32 %v2078_v49, %v534_v15  ;;  %v538_v17 = vmul.f32 %v2083_v53, %v534_v15 }
  0x86   :  { %v539_v25 = vmul.f32 %v2091_v58, %v534_v15  ;;  %v540_v56 = vmul.f32 %v2096_v18, %v534_v15  ;;  %v541_v61 = vmul.f32 %v2098_v37, %v534_v15  ;;  %v542_v13 = vmul.f32 %v2101_v57, %v534_v15 }
  0x87   :  { %v543_v20 = vadd.f32 %v535_v63, %v525_v1  ;;  %v544_v32 = vadd.f32 %v536_v22, %v526_v26  ;;  %v545_v8 = vadd.f32 %v537_v12, %v527_v30  ;;  %v546_v19 = vadd.f32 %v538_v17, %v528_v59 }
  0x88   :  { %v547_v31 = vadd.f32 %v539_v25, %v529_v21  ;;  %v548_v35 = vadd.f32 %v540_v56, %v530_v7  ;;  %v549_v16 = vadd.f32 %v541_v61, %v531_v28  ;;  %v550_v39 = vadd.f32 %v542_v13, %v532_v60 }
  0x89   :  { %v552_v27 = vstv %s2072_s0  ;;  %v570_v46 = vstv %s2076_s1  ;;  %v580_v50 = vstv %s2081_s20  ;;  %v598_v54 = vstv %s2089_s21  ;;  %s2431_s0 = sld [smem:[#allocation2 + $0x42]] }
  0x8a   :  { %v553_v62 = vadd.f32 %v552_v27, %v543_v20  ;;  %v554_v10 = vadd.f32 %v552_v27, %v544_v32  ;;  %v555_v14 = vadd.f32 %v552_v27, %v545_v8  ;;  %v556_v18 = vadd.f32 %v552_v27, %v546_v19  ;;  %s2436_s1 = sld [smem:[#allocation2 + $0x33]] }
  0x8b   :  { %v557_v58 = vadd.f32 %v552_v27, %v547_v31  ;;  %v558_v37 = vadd.f32 %v552_v27, %v548_v35  ;;  %v559_v53 = vadd.f32 %v552_v27, %v549_v16  ;;  %v560_v15 = vadd.f32 %v552_v27, %v550_v39  ;;  %s2483_s20 = sld [smem:[#allocation2 + $0x37]] }
  0x8c   :  { %1446 = vtanh.f32 %v553_v62  ;;  %v571_v1 = vmul.f32 %v2671_v2, %v570_v46  ;;  %v572_v26 = vmul.f32 %v2672_v4, %v570_v46  ;;  %v573_v30 = vmul.f32 %v2673_v34, %v570_v46  ;;  %s2489_s21 = sld [smem:[#allocation2 + $0x3b]] }
  0x8d   :  { %1448 = vtanh.f32 %v554_v10  ;;  %v574_v59 = vmul.f32 %v2674_v38, %v570_v46  ;;  %v575_v21 = vmul.f32 %v2675_v0, %v570_v46  ;;  %v576_v7 = vmul.f32 %v2676_v24, %v570_v46 }
  0x8e   :  { %1450 = vtanh.f32 %v555_v14  ;;  %v577_v28 = vmul.f32 %v2677_v42, %v570_v46  ;;  %v578_v60 = vmul.f32 %v2678_v41, %v570_v46  ;;  %v581_v63 = vmul.f32 %v2679_v33, %v580_v50 }
  0x8f   :  { %1452 = vtanh.f32 %v556_v18  ;;  %v582_v22 = vmul.f32 %v2680_v52, %v580_v50  ;;  %v583_v12 = vmul.f32 %v2681_v55, %v580_v50  ;;  %v584_v17 = vmul.f32 %v2682_v11, %v580_v50 }
  0x90   :  { %1454 = vtanh.f32 %v557_v58  ;;  %v585_v25 = vmul.f32 %v2683_v51, %v580_v50  ;;  %v586_v56 = vmul.f32 %v2684_v23, %v580_v50  ;;  %v587_v61 = vmul.f32 %v2685_v45, %v580_v50 }
  0x91   :  { %1456 = vtanh.f32 %v558_v37  ;;  %v588_v18 = vmul.f32 %v2686_v40, %v580_v50  ;;  %v589_v13 = vadd.f32 %v581_v63, %v571_v1  ;;  %v590_v20 = vadd.f32 %v582_v22, %v572_v26 }
  0x92   :  { %v2139_v32 = vpop.eup %1446  ;;  %1458 = vtanh.f32 %v559_v53  ;;  %v591_v8 = vadd.f32 %v583_v12, %v573_v30  ;;  %v592_v19 = vadd.f32 %v584_v17, %v574_v59  ;;  %v593_v31 = vadd.f32 %v585_v25, %v575_v21 }
  0x93   :  { %2691 = vst [vmem:[#allocation15_spill] sm:$0xff] %v2139_v32  ;;  %v2141_v58 = vpop.eup %1448  ;;  %1460 = vtanh.f32 %v560_v15  ;;  %v594_v35 = vadd.f32 %v586_v56, %v576_v7  ;;  %v595_v16 = vadd.f32 %v587_v61, %v577_v28  ;;  %v596_v39 = vadd.f32 %v588_v18, %v578_v60 }
  0x94   :  { %2692 = vst [vmem:[#allocation16_spill] sm:$0xff] %v2141_v58  ;;  %v2143_v27 = vpop.eup %1450  ;;  %v599_v37 = vmul.f32 %v2008_v43, %v598_v54  ;;  %v600_v46 = vmul.f32 %v2010_v6, %v598_v54  ;;  %v601_v50 = vmul.f32 %v2012_v36, %v598_v54  ;;  %v602_v62 = vmul.f32 %v2017_v3, %v598_v54 }
  0x95   :  { %2693 = vst [vmem:[#allocation17_spill] sm:$0xff] %v2143_v27  ;;  %v2149_v53 = vpop.eup %1452  ;;  %v603_v10 = vmul.f32 %v2025_v44, %v598_v54  ;;  %v604_v14 = vmul.f32 %v2033_v47, %v598_v54  ;;  %v605_v15 = vmul.f32 %v2037_v48, %v598_v54  ;;  %v606_v1 = vmul.f32 %v2039_v29, %v598_v54 }
  0x96   :  { %2694 = vst [vmem:[#allocation18_spill] sm:$0xff] %v2149_v53  ;;  %v2155_v26 = vpop.eup %1454  ;;  %v607_v30 = vadd.f32 %v599_v37, %v589_v13  ;;  %v608_v59 = vadd.f32 %v600_v46, %v590_v20  ;;  %v609_v21 = vadd.f32 %v601_v50, %v591_v8  ;;  %v610_v7 = vadd.f32 %v602_v62, %v592_v19  ;;  %v2699_v8 = vld [vmem:[#allocation11_spill] sm:$0xff]  ;;  %v2702_v37 = vld [vmem:[#allocation14_spill] sm:$0xff] }
  0x97   :  { %2695 = vst [vmem:[#allocation19_spill] sm:$0xff] %v2155_v26  ;;  %v2157_v28 = vpop.eup %1456  ;;  %v611_v60 = vadd.f32 %v603_v10, %v593_v31  ;;  %v612_v63 = vadd.f32 %v604_v14, %v594_v35  ;;  %v613_v22 = vadd.f32 %v605_v15, %v595_v16  ;;  %v614_v12 = vadd.f32 %v606_v1, %v596_v39  ;;  %v2700_v31 = vld [vmem:[#allocation12_spill] sm:$0xff]  ;;  %v2701_v16 = vld [vmem:[#allocation13_spill] sm:$0xff] }
  0x98   :  { %2696 = vst [vmem:[#allocation20_spill] sm:$0xff] %v2157_v28  ;;  %v2159_v17 = vpop.eup %1458  ;;  %v616_v25 = vstv %s2121_s22  ;;  %v634_v56 = vstv %s2126_s23  ;;  %v652_v61 = vstv %s2131_s24  ;;  %v662_v18 = vstv %s2136_s25  ;;  %s2491_s22 = sld [smem:[#allocation2 + $0x3f]] }
  0x99   :  { %2697 = vst [vmem:[#allocation21_spill] sm:$0xff] %v2159_v17  ;;  %v2165_v53 = vpop.eup %1460  ;;  %v617_v54 = vmul.f32 %v2069_v5, %v616_v25  ;;  %v618_v13 = vmul.f32 %v2074_v9, %v616_v25  ;;  %v619_v20 = vmul.f32 %v2078_v49, %v616_v25  ;;  %v620_v19 = vmul.f32 %v2699_v8, %v616_v25  ;;  %s2496_s23 = sld [smem:[#allocation2 + $0x43]] }
  0x9a   :  { %2698 = vst [vmem:[#allocation22_spill] sm:$0xff] %v2165_v53  ;;  %v621_v35 = vmul.f32 %v2700_v31, %v616_v25  ;;  %v622_v39 = vmul.f32 %v2701_v16, %v616_v25  ;;  %v623_v46 = vmul.f32 %v2702_v37, %v616_v25  ;;  %v624_v50 = vmul.f32 %v2101_v57, %v616_v25  ;;  %s2527_s24 = sld [smem:[#allocation2 + $0x44]] }
  0x9b   :  { %v625_v62 = vadd.f32 %v617_v54, %v607_v30  ;;  %v626_v10 = vadd.f32 %v618_v13, %v608_v59  ;;  %v627_v14 = vadd.f32 %v619_v20, %v609_v21  ;;  %v628_v15 = vadd.f32 %v620_v19, %v610_v7  ;;  %s2535_s25 = sld [smem:[#allocation2 + $0x45]] }
  0x9c   :  { %v629_v1 = vadd.f32 %v621_v35, %v611_v60  ;;  %v630_v53 = vadd.f32 %v622_v39, %v612_v63  ;;  %v631_v17 = vadd.f32 %v623_v46, %v613_v22  ;;  %v632_v28 = vadd.f32 %v624_v50, %v614_v12 }
  0x9d   :  { %v635_v26 = vadd.f32 %v634_v56, %v625_v62  ;;  %v636_v27 = vadd.f32 %v634_v56, %v626_v10  ;;  %v637_v58 = vadd.f32 %v634_v56, %v627_v14  ;;  %v638_v32 = vadd.f32 %v634_v56, %v628_v15 }
  0x9e   :  { %v639_v16 = vadd.f32 %v634_v56, %v629_v1  ;;  %v640_v37 = vadd.f32 %v634_v56, %v630_v53  ;;  %v641_v31 = vadd.f32 %v634_v56, %v631_v17  ;;  %v642_v25 = vadd.f32 %v634_v56, %v632_v28 }
  0x9f   :  { %1462 = vtanh.f32 %v635_v26  ;;  %v653_v30 = vmul.f32 %v2671_v2, %v652_v61  ;;  %v654_v59 = vmul.f32 %v2672_v4, %v652_v61  ;;  %v655_v21 = vmul.f32 %v2673_v34, %v652_v61 }
  0xa0   :  { %1464 = vtanh.f32 %v636_v27  ;;  %v656_v7 = vmul.f32 %v2674_v38, %v652_v61  ;;  %v657_v60 = vmul.f32 %v2675_v0, %v652_v61  ;;  %v658_v53 = vmul.f32 %v2676_v24, %v652_v61 }
  0xa1   :  { %1466 = vtanh.f32 %v637_v58  ;;  %v659_v28 = vmul.f32 %v2677_v42, %v652_v61  ;;  %v660_v26 = vmul.f32 %v2678_v41, %v652_v61  ;;  %v663_v63 = vmul.f32 %v2679_v33, %v662_v18 }
  0xa2   :  { %1468 = vtanh.f32 %v638_v32  ;;  %v664_v22 = vmul.f32 %v2680_v52, %v662_v18  ;;  %v665_v12 = vmul.f32 %v2681_v55, %v662_v18  ;;  %v666_v27 = vmul.f32 %v2682_v11, %v662_v18 }
  0xa3   :  { %1470 = vtanh.f32 %v639_v16  ;;  %v667_v17 = vmul.f32 %v2683_v51, %v662_v18  ;;  %v668_v56 = vmul.f32 %v2684_v23, %v662_v18  ;;  %v669_v58 = vmul.f32 %v2685_v45, %v662_v18 }
  0xa4   :  { %1472 = vtanh.f32 %v640_v37  ;;  %v670_v61 = vmul.f32 %v2686_v40, %v662_v18  ;;  %v671_v32 = vadd.f32 %v663_v63, %v653_v30  ;;  %v672_v54 = vadd.f32 %v664_v22, %v654_v59 }
  0xa5   :  { %v2199_v13 = vpop.eup %1462  ;;  %1474 = vtanh.f32 %v641_v31  ;;  %v673_v20 = vadd.f32 %v665_v12, %v655_v21  ;;  %v674_v19 = vadd.f32 %v666_v27, %v656_v7  ;;  %v675_v35 = vadd.f32 %v667_v17, %v657_v60 }
  0xa6   :  { %2703 = vst [vmem:[#allocation23_spill] sm:$0xff] %v2199_v13  ;;  %v2201_v16 = vpop.eup %1464  ;;  %1476 = vtanh.f32 %v642_v25  ;;  %v676_v39 = vadd.f32 %v668_v56, %v658_v53  ;;  %v677_v46 = vadd.f32 %v669_v58, %v659_v28  ;;  %v678_v50 = vadd.f32 %v670_v61, %v660_v26 }
  0xa7   :  { %2704 = vst [vmem:[#allocation24_spill] sm:$0xff] %v2201_v16  ;;  %v2203_v37 = vpop.eup %1466  ;;  %v680_v62 = vstv %s2175_s26  ;;  %v698_v18 = vstv %s2177_s27  ;;  %v716_v10 = vstv %s2179_s28  ;;  %v734_v14 = vstv %s2184_s29  ;;  %s2539_s26 = sld [smem:[#allocation2 + $0x46]]  ;;  %s1642_s29 = smov [#allocation7]  }
  0xa8   :  { %2705 = vst [vmem:[#allocation25_spill] sm:$0xff] %v2203_v37  ;;  %v2209_v15 = vpop.eup %1468  ;;  %v681_v1 = vmul.f32 %v2008_v43, %v680_v62  ;;  %v682_v31 = vmul.f32 %v2010_v6, %v680_v62  ;;  %v683_v30 = vmul.f32 %v2012_v36, %v680_v62  ;;  %v684_v59 = vmul.f32 %v2017_v3, %v680_v62  ;;  %s2568_s27 = sld [smem:[#allocation2 + $0x47]] }
  0xa9   :  { %2706 = vst [vmem:[#allocation26_spill] sm:$0xff] %v2209_v15  ;;  %v2215_v25 = vpop.eup %1470  ;;  %v685_v21 = vmul.f32 %v2025_v44, %v680_v62  ;;  %v686_v7 = vmul.f32 %v2033_v47, %v680_v62  ;;  %v687_v60 = vmul.f32 %v2037_v48, %v680_v62  ;;  %v688_v53 = vmul.f32 %v2039_v29, %v680_v62  ;;  %s2579_s28 = sld [smem:[#allocation2 + $0x48]] }
  0xaa   :  { %2707 = vst [vmem:[#allocation27_spill] sm:$0xff] %v2215_v25  ;;  %v2221_v28 = vpop.eup %1472  ;;  %v689_v26 = vadd.f32 %v681_v1, %v671_v32  ;;  %v690_v63 = vadd.f32 %v682_v31, %v672_v54  ;;  %v691_v22 = vadd.f32 %v683_v30, %v673_v20  ;;  %v692_v12 = vadd.f32 %v684_v59, %v674_v19  ;;  %v2711_v32 = vld [vmem:[#allocation12_spill] sm:$0xff]  ;;  %v2712_v20 = vld [vmem:[#allocation13_spill] sm:$0xff] }
  0xab   :  { %2708 = vst [vmem:[#allocation28_spill] sm:$0xff] %v2221_v28  ;;  %v2223_v27 = vpop.eup %1474  ;;  %v693_v17 = vadd.f32 %v685_v21, %v675_v35  ;;  %v694_v56 = vadd.f32 %v686_v7, %v676_v39  ;;  %v695_v58 = vadd.f32 %v687_v60, %v677_v46  ;;  %v696_v61 = vadd.f32 %v688_v53, %v678_v50  ;;  %v2713_v35 = vld [vmem:[#allocation14_spill] sm:$0xff] }
  0xac   :  { %2709 = vst [vmem:[#allocation29_spill] sm:$0xff] %v2223_v27  ;;  %v2225_v25 = vpop.eup %1476  ;;  %v699_v15 = vmul.f32 %v2069_v5, %v698_v18  ;;  %v700_v37 = vmul.f32 %v2074_v9, %v698_v18  ;;  %v701_v62 = vmul.f32 %v2078_v49, %v698_v18  ;;  %v702_v28 = vmul.f32 %v2699_v8, %v698_v18 }
  0xad   :  { %2710 = vst [vmem:[#allocation11_spill] sm:$0xff] %v2225_v25  ;;  %v703_v54 = vmul.f32 %v2711_v32, %v698_v18  ;;  %v704_v19 = vmul.f32 %v2712_v20, %v698_v18  ;;  %v705_v39 = vmul.f32 %v2713_v35, %v698_v18  ;;  %v706_v46 = vmul.f32 %v2101_v57, %v698_v18 }
  0xae   :  { %v707_v50 = vadd.f32 %v699_v15, %v689_v26  ;;  %v708_v1 = vadd.f32 %v700_v37, %v690_v63  ;;  %v709_v31 = vadd.f32 %v701_v62, %v691_v22  ;;  %v710_v30 = vadd.f32 %v702_v28, %v692_v12 }
  0xaf   :  { %v711_v59 = vadd.f32 %v703_v54, %v693_v17  ;;  %v712_v21 = vadd.f32 %v704_v19, %v694_v56  ;;  %v713_v7 = vadd.f32 %v705_v39, %v695_v58  ;;  %v714_v60 = vadd.f32 %v706_v46, %v696_v61 }
  0xb0   :  { %v717_v53 = vadd.f32 %v716_v10, %v707_v50  ;;  %v718_v25 = vadd.f32 %v716_v10, %v708_v1  ;;  %v719_v27 = vadd.f32 %v716_v10, %v709_v31  ;;  %v720_v16 = vadd.f32 %v716_v10, %v710_v30 }
  0xb1   :  { %v721_v13 = vadd.f32 %v716_v10, %v711_v59  ;;  %v722_v20 = vadd.f32 %v716_v10, %v712_v21  ;;  %v723_v35 = vadd.f32 %v716_v10, %v713_v7  ;;  %v724_v32 = vadd.f32 %v716_v10, %v714_v60  ;;  %v2714_v7 = vld [vmem:[#allocation12_spill] sm:$0xff] }
  0xb2   :  { %1478 = vtanh.f32 %v717_v53  ;;  %v735_v37 = vmul.f32 %v2671_v2, %v734_v14  ;;  %v736_v18 = vmul.f32 %v2672_v4, %v734_v14  ;;  %v737_v15 = vmul.f32 %v2673_v34, %v734_v14  ;;  %v2715_v53 = vld [vmem:[#allocation13_spill] sm:$0xff] }
  0xb3   :  { %1480 = vtanh.f32 %v718_v25  ;;  %v738_v28 = vmul.f32 %v2674_v38, %v734_v14  ;;  %v739_v26 = vmul.f32 %v2675_v0, %v734_v14  ;;  %v740_v63 = vmul.f32 %v2676_v24, %v734_v14 }
  0xb4   :  { %1482 = vtanh.f32 %v719_v27  ;;  %v741_v10 = vmul.f32 %v2677_v42, %v734_v14  ;;  %v742_v22 = vmul.f32 %v2678_v41, %v734_v14  ;;  %v744_v12 = vstv %s2231_s30  ;;  %s1230_s30 = sshll.u32 %s1642_s29, 4  ;;  %s1231_s30 = int_to_ptr.vmem [resolvable:$true] %s1230_s30 }
  0xb5   :  { %1484 = vtanh.f32 %v720_v16  ;;  %v745_v2 = vmul.f32 %v2679_v33, %v744_v12  ;;  %v746_v4 = vmul.f32 %v2680_v52, %v744_v12  ;;  %v747_v34 = vmul.f32 %v2681_v55, %v744_v12 }
  0xb6   :  { %1486 = vtanh.f32 %v721_v13  ;;  %v748_v38 = vmul.f32 %v2682_v11, %v744_v12  ;;  %v749_v0 = vmul.f32 %v2683_v51, %v744_v12  ;;  %v750_v24 = vmul.f32 %v2684_v23, %v744_v12 }
  0xb7   :  { %1488 = vtanh.f32 %v722_v20  ;;  %v751_v42 = vmul.f32 %v2685_v45, %v744_v12  ;;  %v752_v41 = vmul.f32 %v2686_v40, %v744_v12  ;;  %v753_v33 = vadd.f32 %v745_v2, %v735_v37 }
  0xb8   :  { %v2260_v16 = vpop.eup %1478  ;;  %1490 = vtanh.f32 %v723_v35  ;;  %v754_v52 = vadd.f32 %v746_v4, %v736_v18  ;;  %v755_v55 = vadd.f32 %v747_v34, %v737_v15  ;;  %v756_v13 = vadd.f32 %v748_v38, %v738_v28  ;;  %v2716_v18 = vld [vmem:[#allocation14_spill] sm:$0xff] }
  0xb9   :  { %v2262_v11 = vpop.eup %1480  ;;  %1492 = vtanh.f32 %v724_v32  ;;  %v757_v51 = vadd.f32 %v749_v0, %v739_v26  ;;  %v758_v23 = vadd.f32 %v750_v24, %v740_v63  ;;  %v759_v14 = vadd.f32 %v751_v42, %v741_v10 }
  0xba   :  { %v2264_v25 = vpop.eup %1482  ;;  %v760_v45 = vadd.f32 %v752_v41, %v742_v22  ;;  %v762_v27 = vstv %s2237_s3  ;;  %v780_v17 = vstv %s2239_s4  ;;  %v798_v40 = vstv %s2244_s5  ;;  %s1232_s5 = sshll.u32 %s2591_s2, 4  ;;  %s1233_s5 = int_to_ptr.hbm [resolvable:$true] %s1232_s5 }
  0xbb   :  { %v2269_v56 = vpop.eup %1484  ;;  %v763_v58 = vmul.f32 %v2008_v43, %v762_v27  ;;  %v764_v61 = vmul.f32 %v2010_v6, %v762_v27  ;;  %v765_v62 = vmul.f32 %v2012_v36, %v762_v27  ;;  %v766_v54 = vmul.f32 %v2017_v3, %v762_v27 }
  0xbc   :  { %v2277_v32 = vpop.eup %1486  ;;  %v767_v20 = vmul.f32 %v2025_v44, %v762_v27  ;;  %v768_v19 = vmul.f32 %v2033_v47, %v762_v27  ;;  %v769_v35 = vmul.f32 %v2037_v48, %v762_v27  ;;  %v770_v39 = vmul.f32 %v2039_v29, %v762_v27 }
  0xbd   :  { %v2285_v43 = vpop.eup %1488  ;;  %v771_v6 = vadd.f32 %v763_v58, %v753_v33  ;;  %v772_v36 = vadd.f32 %v764_v61, %v754_v52  ;;  %v773_v46 = vadd.f32 %v765_v62, %v755_v55  ;;  %v774_v3 = vadd.f32 %v766_v54, %v756_v13  ;;  %v2717_v52 = vld [vmem:[#allocation15_spill] sm:$0xff]  ;;  %v2718_v13 = vld [vmem:[#allocation16_spill] sm:$0xff] }
  0xbe   :  { %v2289_v50 = vpop.eup %1490  ;;  %v775_v1 = vadd.f32 %v767_v20, %v757_v51  ;;  %v776_v44 = vadd.f32 %v768_v19, %v758_v23  ;;  %v777_v31 = vadd.f32 %v769_v35, %v759_v14  ;;  %v778_v47 = vadd.f32 %v770_v39, %v760_v45  ;;  %v2719_v23 = vld [vmem:[#allocation17_spill] sm:$0xff]  ;;  %v2720_v45 = vld [vmem:[#allocation18_spill] sm:$0xff]  ;;  %v2722_v61 = vld [vmem:[#allocation20_spill] sm:$0xff] }
  0xbf   :  { %v2291_v30 = vpop.eup %1492  ;;  %v781_v48 = vmul.f32 %v2069_v5, %v780_v17  ;;  %v782_v29 = vmul.f32 %v2074_v9, %v780_v17  ;;  %v783_v59 = vmul.f32 %v2078_v49, %v780_v17  ;;  %v784_v21 = vmul.f32 %v2699_v8, %v780_v17  ;;  %v2724_v20 = vld [vmem:[#allocation22_spill] sm:$0xff]  ;;  %v2725_v35 = vld [vmem:[#allocation23_spill] sm:$0xff] }
  0xc0   :  { %v785_v60 = vmul.f32 %v2714_v7, %v780_v17  ;;  %v786_v37 = vmul.f32 %v2715_v53, %v780_v17  ;;  %v787_v15 = vmul.f32 %v2716_v18, %v780_v17  ;;  %v788_v28 = vmul.f32 %v2101_v57, %v780_v17  ;;  %v2721_v17 = vld [vmem:[#allocation19_spill] sm:$0xff] }
  0xc1   :  { %v789_v26 = vadd.f32 %v781_v48, %v771_v6  ;;  %v790_v63 = vadd.f32 %v782_v29, %v772_v36  ;;  %v791_v10 = vadd.f32 %v783_v59, %v773_v46  ;;  %v792_v5 = vadd.f32 %v784_v21, %v774_v3  ;;  %v2726_v6 = vld [vmem:[#allocation24_spill] sm:$0xff]  ;;  %v2727_v46 = vld [vmem:[#allocation25_spill] sm:$0xff] }
  0xc2   :  { %v793_v9 = vadd.f32 %v785_v60, %v775_v1  ;;  %v794_v22 = vadd.f32 %v786_v37, %v776_v44  ;;  %v795_v49 = vadd.f32 %v787_v15, %v777_v31  ;;  %v796_v12 = vadd.f32 %v788_v28, %v778_v47  ;;  %v2728_v1 = vld [vmem:[#allocation26_spill] sm:$0xff]  ;;  %v2729_v31 = vld [vmem:[#allocation27_spill] sm:$0xff]  ;;  %v2730_v48 = vld [vmem:[#allocation28_spill] sm:$0xff] }
  0xc3   :  { %v799_v8 = vadd.f32 %v798_v40, %v789_v26  ;;  %v800_v2 = vadd.f32 %v798_v40, %v790_v63  ;;  %v801_v4 = vadd.f32 %v798_v40, %v791_v10  ;;  %v802_v34 = vadd.f32 %v798_v40, %v792_v5  ;;  %v2731_v59 = vld [vmem:[#allocation29_spill] sm:$0xff]  ;;  %v2732_v60 = vld [vmem:[#allocation11_spill] sm:$0xff] }
  0xc4   :  { %v803_v38 = vadd.f32 %v798_v40, %v793_v9  ;;  %v804_v0 = vadd.f32 %v798_v40, %v794_v22  ;;  %v805_v24 = vadd.f32 %v798_v40, %v795_v49  ;;  %v806_v42 = vadd.f32 %v798_v40, %v796_v12  ;;  %v2723_v40 = vld [vmem:[#allocation21_spill] sm:$0xff] }
  0xc5   :  { %1494 = vtanh.f32 %v799_v8  ;;  %v816_v57 = vstv %s2275_s6  ;;  %v826_v41 = vstv %s2283_s7  ;;  %v844_v33 = vstv %s2287_s8 }
  0xc6   :  { %1496 = vtanh.f32 %v800_v2  ;;  %v817_v55 = vmul.f32 %v2717_v52, %v816_v57  ;;  %v818_v51 = vmul.f32 %v2718_v13, %v816_v57  ;;  %v819_v14 = vmul.f32 %v2719_v23, %v816_v57 }
  0xc7   :  { %1498 = vtanh.f32 %v801_v4  ;;  %v820_v27 = vmul.f32 %v2720_v45, %v816_v57  ;;  %v821_v58 = vmul.f32 %v2721_v17, %v816_v57  ;;  %v822_v62 = vmul.f32 %v2722_v61, %v816_v57 }
  0xc8   :  { %1500 = vtanh.f32 %v802_v34  ;;  %v823_v54 = vmul.f32 %v2723_v40, %v816_v57  ;;  %v824_v19 = vmul.f32 %v2724_v20, %v816_v57  ;;  %v827_v39 = vmul.f32 %v2725_v35, %v826_v41 }
  0xc9   :  { %1502 = vtanh.f32 %v803_v38  ;;  %v828_v36 = vmul.f32 %v2726_v6, %v826_v41  ;;  %v829_v3 = vmul.f32 %v2727_v46, %v826_v41  ;;  %v830_v44 = vmul.f32 %v2728_v1, %v826_v41 }
  0xca   :  { %1504 = vtanh.f32 %v804_v0  ;;  %v831_v47 = vmul.f32 %v2729_v31, %v826_v41  ;;  %v832_v29 = vmul.f32 %v2730_v48, %v826_v41  ;;  %v833_v21 = vmul.f32 %v2731_v59, %v826_v41 }
  0xcb   :  { %v2321_v7 = vpop.eup %1494  ;;  %1506 = vtanh.f32 %v805_v24  ;;  %v834_v53 = vmul.f32 %v2732_v60, %v826_v41  ;;  %v835_v37 = vadd.f32 %v827_v39, %v817_v55  ;;  %v836_v18 = vadd.f32 %v828_v36, %v818_v51 }
  0xcc   :  { %v2326_v15 = vpop.eup %1496  ;;  %1508 = vtanh.f32 %v806_v42  ;;  %v837_v28 = vadd.f32 %v829_v3, %v819_v14  ;;  %v838_v26 = vadd.f32 %v830_v44, %v820_v27  ;;  %v839_v63 = vadd.f32 %v831_v47, %v821_v58 }
  0xcd   :  { %v2330_v10 = vpop.eup %1498  ;;  %v840_v5 = vadd.f32 %v832_v29, %v822_v62  ;;  %v841_v9 = vadd.f32 %v833_v21, %v823_v54  ;;  %v842_v22 = vadd.f32 %v834_v53, %v824_v19  ;;  %v845_v49 = vmul.f32 %v2260_v16, %v844_v33 }
  0xce   :  { %v2335_v12 = vpop.eup %1500  ;;  %v846_v8 = vmul.f32 %v2262_v11, %v844_v33  ;;  %v847_v2 = vmul.f32 %v2264_v25, %v844_v33  ;;  %v848_v4 = vmul.f32 %v2269_v56, %v844_v33  ;;  %v849_v34 = vmul.f32 %v2277_v32, %v844_v33 }
  0xcf   :  { %2733 = vst [vmem:[#allocation12_spill] sm:$0xff] %v2335_v12  ;;  %v2343_v38 = vpop.eup %1502  ;;  %v850_v0 = vmul.f32 %v2285_v43, %v844_v33  ;;  %v851_v24 = vmul.f32 %v2289_v50, %v844_v33  ;;  %v852_v42 = vmul.f32 %v2291_v30, %v844_v33  ;;  %v853_v57 = vadd.f32 %v845_v49, %v835_v37 }
  0xd0   :  { %2734 = vst [vmem:[#allocation13_spill] sm:$0xff] %v2343_v38  ;;  %v2348_v41 = vpop.eup %1504  ;;  %v854_v55 = vadd.f32 %v846_v8, %v836_v18  ;;  %v855_v51 = vadd.f32 %v847_v2, %v837_v28  ;;  %v856_v14 = vadd.f32 %v848_v4, %v838_v26  ;;  %v857_v27 = vadd.f32 %v849_v34, %v839_v63 }
  0xd1   :  { %2735 = vst [vmem:[#allocation14_spill] sm:$0xff] %v2348_v41  ;;  %v2350_v58 = vpop.eup %1506  ;;  %v858_v62 = vadd.f32 %v850_v0, %v840_v5  ;;  %v859_v54 = vadd.f32 %v851_v24, %v841_v9  ;;  %v860_v19 = vadd.f32 %v852_v42, %v842_v22  ;;  %v862_v39 = vstv %s2316_s9 }
  0xd2   :  { %2736 = vst [vmem:[#allocation15_spill] sm:$0xff] %v2350_v58  ;;  %v2353_v36 = vpop.eup %1508  ;;  %v863_v3 = vmul.f32 %v2321_v7, %v862_v39  ;;  %v864_v33 = vmul.f32 %v2326_v15, %v862_v39  ;;  %v865_v44 = vmul.f32 %v2330_v10, %v862_v39  ;;  %v866_v47 = vmul.f32 %v2335_v12, %v862_v39 }
  0xd3   :  { %v867_v29 = vmul.f32 %v2343_v38, %v862_v39  ;;  %v868_v21 = vmul.f32 %v2348_v41, %v862_v39  ;;  %v869_v53 = vmul.f32 %v2350_v58, %v862_v39  ;;  %v870_v37 = vmul.f32 %v2353_v36, %v862_v39 }
  0xd4   :  { %v871_v18 = vadd.f32 %v863_v3, %v853_v57  ;;  %v872_v28 = vadd.f32 %v864_v33, %v854_v55  ;;  %v873_v26 = vadd.f32 %v865_v44, %v855_v51  ;;  %v874_v63 = vadd.f32 %v866_v47, %v856_v14 }
  0xd5   :  { %v875_v5 = vadd.f32 %v867_v29, %v857_v27  ;;  %v876_v9 = vadd.f32 %v868_v21, %v858_v62  ;;  %v877_v22 = vadd.f32 %v869_v53, %v859_v54  ;;  %v878_v49 = vadd.f32 %v870_v37, %v860_v19 }
  0xd6   :  { %v880_v8 = vstv %s2328_s11  ;;  %v898_v2 = vstv %s2324_s10  ;;  %v908_v4 = vstv %s2333_s12  ;;  %v926_v34 = vstv %s2341_s13 }
  0xd7   :  { %v881_v0 = vadd.f32 %v880_v8, %v871_v18  ;;  %v882_v24 = vadd.f32 %v880_v8, %v872_v28  ;;  %v883_v42 = vadd.f32 %v880_v8, %v873_v26  ;;  %v884_v41 = vadd.f32 %v880_v8, %v874_v63 }
  0xd8   :  { %v885_v38 = vadd.f32 %v880_v8, %v875_v5  ;;  %v886_v58 = vadd.f32 %v880_v8, %v876_v9  ;;  %v887_v12 = vadd.f32 %v880_v8, %v877_v22  ;;  %v888_v39 = vadd.f32 %v880_v8, %v878_v49 }
  0xd9   :  { %1510 = vtanh.f32 %v881_v0  ;;  %v899_v57 = vmul.f32 %v2717_v52, %v898_v2  ;;  %v900_v55 = vmul.f32 %v2718_v13, %v898_v2  ;;  %v901_v51 = vmul.f32 %v2719_v23, %v898_v2 }
  0xda   :  { %1512 = vtanh.f32 %v882_v24  ;;  %v902_v14 = vmul.f32 %v2720_v45, %v898_v2  ;;  %v903_v27 = vmul.f32 %v2721_v17, %v898_v2  ;;  %v904_v62 = vmul.f32 %v2722_v61, %v898_v2 }
  0xdb   :  { %1514 = vtanh.f32 %v883_v42  ;;  %v905_v54 = vmul.f32 %v2723_v40, %v898_v2  ;;  %v906_v19 = vmul.f32 %v2724_v20, %v898_v2  ;;  %v909_v3 = vmul.f32 %v2725_v35, %v908_v4 }
  0xdc   :  { %1516 = vtanh.f32 %v884_v41  ;;  %v910_v33 = vmul.f32 %v2726_v6, %v908_v4  ;;  %v911_v44 = vmul.f32 %v2727_v46, %v908_v4  ;;  %v912_v47 = vmul.f32 %v2728_v1, %v908_v4 }
  0xdd   :  { %1518 = vtanh.f32 %v885_v38  ;;  %v913_v29 = vmul.f32 %v2729_v31, %v908_v4  ;;  %v914_v21 = vmul.f32 %v2730_v48, %v908_v4  ;;  %v915_v53 = vmul.f32 %v2731_v59, %v908_v4 }
  0xde   :  { %1520 = vtanh.f32 %v886_v58  ;;  %v916_v41 = vmul.f32 %v2732_v60, %v908_v4  ;;  %v917_v37 = vadd.f32 %v909_v3, %v899_v57  ;;  %v918_v18 = vadd.f32 %v910_v33, %v900_v55 }
  0xdf   :  { %v2391_v28 = vpop.eup %1510  ;;  %1522 = vtanh.f32 %v887_v12  ;;  %v919_v26 = vadd.f32 %v911_v44, %v901_v51  ;;  %v920_v63 = vadd.f32 %v912_v47, %v902_v14  ;;  %v921_v5 = vadd.f32 %v913_v29, %v903_v27 }
  0xe0   :  { %2737 = vst [vmem:[#allocation16_spill] sm:$0xff] %v2391_v28  ;;  %v2393_v38 = vpop.eup %1512  ;;  %1524 = vtanh.f32 %v888_v39  ;;  %v922_v9 = vadd.f32 %v914_v21, %v904_v62  ;;  %v923_v22 = vadd.f32 %v915_v53, %v905_v54  ;;  %v924_v49 = vadd.f32 %v916_v41, %v906_v19 }
  0xe1   :  { %2738 = vst [vmem:[#allocation17_spill] sm:$0xff] %v2393_v38  ;;  %v2395_v8 = vpop.eup %1514  ;;  %v927_v58 = vmul.f32 %v2260_v16, %v926_v34  ;;  %v928_v2 = vmul.f32 %v2262_v11, %v926_v34  ;;  %v929_v4 = vmul.f32 %v2264_v25, %v926_v34  ;;  %v930_v0 = vmul.f32 %v2269_v56, %v926_v34 }
  0xe2   :  { %2739 = vst [vmem:[#allocation18_spill] sm:$0xff] %v2395_v8  ;;  %v2401_v12 = vpop.eup %1516  ;;  %v931_v24 = vmul.f32 %v2277_v32, %v926_v34  ;;  %v932_v42 = vmul.f32 %v2285_v43, %v926_v34  ;;  %v933_v39 = vmul.f32 %v2289_v50, %v926_v34  ;;  %v934_v57 = vmul.f32 %v2291_v30, %v926_v34 }
  0xe3   :  { %2740 = vst [vmem:[#allocation19_spill] sm:$0xff] %v2401_v12  ;;  %v2407_v55 = vpop.eup %1518  ;;  %v935_v51 = vadd.f32 %v927_v58, %v917_v37  ;;  %v936_v14 = vadd.f32 %v928_v2, %v918_v18  ;;  %v937_v27 = vadd.f32 %v929_v4, %v919_v26  ;;  %v938_v62 = vadd.f32 %v930_v0, %v920_v63  ;;  %v2745_v26 = vld [vmem:[#allocation12_spill] sm:$0xff]  ;;  %v2748_v58 = vld [vmem:[#allocation15_spill] sm:$0xff] }
  0xe4   :  { %2741 = vst [vmem:[#allocation20_spill] sm:$0xff] %v2407_v55  ;;  %v2409_v54 = vpop.eup %1520  ;;  %v939_v19 = vadd.f32 %v931_v24, %v921_v5  ;;  %v940_v3 = vadd.f32 %v932_v42, %v922_v9  ;;  %v941_v33 = vadd.f32 %v933_v39, %v923_v22  ;;  %v942_v44 = vadd.f32 %v934_v57, %v924_v49  ;;  %v2746_v5 = vld [vmem:[#allocation13_spill] sm:$0xff]  ;;  %v2747_v22 = vld [vmem:[#allocation14_spill] sm:$0xff] }
  0xe5   :  { %2742 = vst [vmem:[#allocation21_spill] sm:$0xff] %v2409_v54  ;;  %v2411_v47 = vpop.eup %1522  ;;  %v944_v29 = vstv %s2373_s14  ;;  %v962_v21 = vstv %s2378_s15  ;;  %v980_v53 = vstv %s2383_s16  ;;  %v990_v41 = vstv %s2388_s17 }
  0xe6   :  { %2743 = vst [vmem:[#allocation22_spill] sm:$0xff] %v2411_v47  ;;  %v2417_v12 = vpop.eup %1524  ;;  %v945_v34 = vmul.f32 %v2321_v7, %v944_v29  ;;  %v946_v37 = vmul.f32 %v2326_v15, %v944_v29  ;;  %v947_v18 = vmul.f32 %v2330_v10, %v944_v29  ;;  %v948_v63 = vmul.f32 %v2745_v26, %v944_v29 }
  0xe7   :  { %2744 = vst [vmem:[#allocation23_spill] sm:$0xff] %v2417_v12  ;;  %v949_v9 = vmul.f32 %v2746_v5, %v944_v29  ;;  %v950_v49 = vmul.f32 %v2747_v22, %v944_v29  ;;  %v951_v2 = vmul.f32 %v2748_v58, %v944_v29  ;;  %v952_v4 = vmul.f32 %v2353_v36, %v944_v29 }
  0xe8   :  { %v953_v0 = vadd.f32 %v945_v34, %v935_v51  ;;  %v954_v24 = vadd.f32 %v946_v37, %v936_v14  ;;  %v955_v42 = vadd.f32 %v947_v18, %v937_v27  ;;  %v956_v39 = vadd.f32 %v948_v63, %v938_v62 }
  0xe9   :  { %v957_v57 = vadd.f32 %v949_v9, %v939_v19  ;;  %v958_v12 = vadd.f32 %v950_v49, %v940_v3  ;;  %v959_v47 = vadd.f32 %v951_v2, %v941_v33  ;;  %v960_v54 = vadd.f32 %v952_v4, %v942_v44 }
  0xea   :  { %v963_v55 = vadd.f32 %v962_v21, %v953_v0  ;;  %v964_v8 = vadd.f32 %v962_v21, %v954_v24  ;;  %v965_v38 = vadd.f32 %v962_v21, %v955_v42  ;;  %v966_v28 = vadd.f32 %v962_v21, %v956_v39 }
  0xeb   :  { %v967_v22 = vadd.f32 %v962_v21, %v957_v57  ;;  %v968_v58 = vadd.f32 %v962_v21, %v958_v12  ;;  %v969_v5 = vadd.f32 %v962_v21, %v959_v47  ;;  %v970_v29 = vadd.f32 %v962_v21, %v960_v54 }
  0xec   :  { %1526 = vtanh.f32 %v963_v55  ;;  %v981_v51 = vmul.f32 %v2717_v52, %v980_v53  ;;  %v982_v14 = vmul.f32 %v2718_v13, %v980_v53  ;;  %v983_v27 = vmul.f32 %v2719_v23, %v980_v53 }
  0xed   :  { %1528 = vtanh.f32 %v964_v8  ;;  %v984_v62 = vmul.f32 %v2720_v45, %v980_v53  ;;  %v985_v19 = vmul.f32 %v2721_v17, %v980_v53  ;;  %v986_v12 = vmul.f32 %v2722_v61, %v980_v53 }
  0xee   :  { %1530 = vtanh.f32 %v965_v38  ;;  %v987_v54 = vmul.f32 %v2723_v40, %v980_v53  ;;  %v988_v55 = vmul.f32 %v2724_v20, %v980_v53  ;;  %v991_v3 = vmul.f32 %v2725_v35, %v990_v41 }
  0xef   :  { %1532 = vtanh.f32 %v966_v28  ;;  %v992_v33 = vmul.f32 %v2726_v6, %v990_v41  ;;  %v993_v44 = vmul.f32 %v2727_v46, %v990_v41  ;;  %v994_v8 = vmul.f32 %v2728_v1, %v990_v41 }
  0xf0   :  { %1534 = vtanh.f32 %v967_v22  ;;  %v995_v47 = vmul.f32 %v2729_v31, %v990_v41  ;;  %v996_v21 = vmul.f32 %v2730_v48, %v990_v41  ;;  %v997_v38 = vmul.f32 %v2731_v59, %v990_v41 }
  0xf1   :  { %1536 = vtanh.f32 %v968_v58  ;;  %v998_v53 = vmul.f32 %v2732_v60, %v990_v41  ;;  %v999_v28 = vadd.f32 %v991_v3, %v981_v51  ;;  %v1000_v34 = vadd.f32 %v992_v33, %v982_v14 }
  0xf2   :  { %v2451_v37 = vpop.eup %1526  ;;  %1538 = vtanh.f32 %v969_v5  ;;  %v1001_v18 = vadd.f32 %v993_v44, %v983_v27  ;;  %v1002_v63 = vadd.f32 %v994_v8, %v984_v62  ;;  %v1003_v9 = vadd.f32 %v995_v47, %v985_v19 }
  0xf3   :  { %2749 = vst [vmem:[#allocation24_spill] sm:$0xff] %v2451_v37  ;;  %v2453_v22 = vpop.eup %1528  ;;  %1540 = vtanh.f32 %v970_v29  ;;  %v1004_v49 = vadd.f32 %v996_v21, %v986_v12  ;;  %v1005_v2 = vadd.f32 %v997_v38, %v987_v54  ;;  %v1006_v4 = vadd.f32 %v998_v53, %v988_v55 }
  0xf4   :  { %2750 = vst [vmem:[#allocation25_spill] sm:$0xff] %v2453_v22  ;;  %v2455_v58 = vpop.eup %1530  ;;  %v1008_v0 = vstv %s2427_s18  ;;  %v1026_v41 = vstv %s2429_s19  ;;  %v1044_v24 = vstv %s2431_s0  ;;  %v1062_v42 = vstv %s2436_s1 }
  0xf5   :  { %2751 = vst [vmem:[#allocation26_spill] sm:$0xff] %v2455_v58  ;;  %v2461_v39 = vpop.eup %1532  ;;  %v1009_v57 = vmul.f32 %v2260_v16, %v1008_v0  ;;  %v1010_v5 = vmul.f32 %v2262_v11, %v1008_v0  ;;  %v1011_v51 = vmul.f32 %v2264_v25, %v1008_v0  ;;  %v1012_v14 = vmul.f32 %v2269_v56, %v1008_v0 }
  0xf6   :  { %2752 = vst [vmem:[#allocation27_spill] sm:$0xff] %v2461_v39  ;;  %v2467_v29 = vpop.eup %1534  ;;  %v1013_v27 = vmul.f32 %v2277_v32, %v1008_v0  ;;  %v1014_v62 = vmul.f32 %v2285_v43, %v1008_v0  ;;  %v1015_v19 = vmul.f32 %v2289_v50, %v1008_v0  ;;  %v1016_v12 = vmul.f32 %v2291_v30, %v1008_v0 }
  0xf7   :  { %2753 = vst [vmem:[#allocation28_spill] sm:$0xff] %v2467_v29  ;;  %v2473_v54 = vpop.eup %1536  ;;  %v1017_v55 = vadd.f32 %v1009_v57, %v999_v28  ;;  %v1018_v3 = vadd.f32 %v1010_v5, %v1000_v34  ;;  %v1019_v33 = vadd.f32 %v1011_v51, %v1001_v18  ;;  %v1020_v44 = vadd.f32 %v1012_v14, %v1002_v63  ;;  %v2757_v28 = vld [vmem:[#allocation13_spill] sm:$0xff]  ;;  %v2758_v18 = vld [vmem:[#allocation14_spill] sm:$0xff] }
  0xf8   :  { %2754 = vst [vmem:[#allocation29_spill] sm:$0xff] %v2473_v54  ;;  %v2475_v8 = vpop.eup %1538  ;;  %v1021_v47 = vadd.f32 %v1013_v27, %v1003_v9  ;;  %v1022_v21 = vadd.f32 %v1014_v62, %v1004_v49  ;;  %v1023_v38 = vadd.f32 %v1015_v19, %v1005_v2  ;;  %v1024_v53 = vadd.f32 %v1016_v12, %v1006_v4  ;;  %v2759_v9 = vld [vmem:[#allocation15_spill] sm:$0xff] }
  0xf9   :  { %2755 = vst [vmem:[#allocation11_spill] sm:$0xff] %v2475_v8  ;;  %v2477_v29 = vpop.eup %1540  ;;  %v1027_v39 = vmul.f32 %v2321_v7, %v1026_v41  ;;  %v1028_v58 = vmul.f32 %v2326_v15, %v1026_v41  ;;  %v1029_v0 = vmul.f32 %v2330_v10, %v1026_v41  ;;  %v1030_v54 = vmul.f32 %v2745_v26, %v1026_v41 }
  0xfa   :  { %2756 = vst [vmem:[#allocation12_spill] sm:$0xff] %v2477_v29  ;;  %v1031_v34 = vmul.f32 %v2757_v28, %v1026_v41  ;;  %v1032_v63 = vmul.f32 %v2758_v18, %v1026_v41  ;;  %v1033_v49 = vmul.f32 %v2759_v9, %v1026_v41  ;;  %v1034_v2 = vmul.f32 %v2353_v36, %v1026_v41 }
  0xfb   :  { %v1035_v4 = vadd.f32 %v1027_v39, %v1017_v55  ;;  %v1036_v57 = vadd.f32 %v1028_v58, %v1018_v3  ;;  %v1037_v5 = vadd.f32 %v1029_v0, %v1019_v33  ;;  %v1038_v51 = vadd.f32 %v1030_v54, %v1020_v44 }
  0xfc   :  { %v1039_v14 = vadd.f32 %v1031_v34, %v1021_v47  ;;  %v1040_v27 = vadd.f32 %v1032_v63, %v1022_v21  ;;  %v1041_v62 = vadd.f32 %v1033_v49, %v1023_v38  ;;  %v1042_v19 = vadd.f32 %v1034_v2, %v1024_v53 }
  0xfd   :  { %v1045_v12 = vadd.f32 %v1044_v24, %v1035_v4  ;;  %v1046_v29 = vadd.f32 %v1044_v24, %v1036_v57  ;;  %v1047_v8 = vadd.f32 %v1044_v24, %v1037_v5  ;;  %v1048_v22 = vadd.f32 %v1044_v24, %v1038_v51 }
  0xfe   :  { %v1049_v37 = vadd.f32 %v1044_v24, %v1039_v14  ;;  %v1050_v18 = vadd.f32 %v1044_v24, %v1040_v27  ;;  %v1051_v9 = vadd.f32 %v1044_v24, %v1041_v62  ;;  %v1052_v28 = vadd.f32 %v1044_v24, %v1042_v19  ;;  %v2760_v62 = vld [vmem:[#allocation13_spill] sm:$0xff] }
  0xff   :  { %1542 = vtanh.f32 %v1045_v12  ;;  %v1063_v58 = vmul.f32 %v2717_v52, %v1062_v42  ;;  %v1064_v41 = vmul.f32 %v2718_v13, %v1062_v42  ;;  %v1065_v39 = vmul.f32 %v2719_v23, %v1062_v42  ;;  %v2761_v12 = vld [vmem:[#allocation14_spill] sm:$0xff] }
 0x100   :  { %1544 = vtanh.f32 %v1046_v29  ;;  %v1066_v54 = vmul.f32 %v2720_v45, %v1062_v42  ;;  %v1067_v55 = vmul.f32 %v2721_v17, %v1062_v42  ;;  %v1068_v3 = vmul.f32 %v2722_v61, %v1062_v42 }
 0x101   :  { %1546 = vtanh.f32 %v1047_v8  ;;  %v1069_v24 = vmul.f32 %v2723_v40, %v1062_v42  ;;  %v1070_v33 = vmul.f32 %v2724_v20, %v1062_v42  ;;  %v1072_v44 = vstv %s2483_s20 }
 0x102   :  { %1548 = vtanh.f32 %v1048_v22  ;;  %v1073_v52 = vmul.f32 %v2725_v35, %v1072_v44  ;;  %v1074_v13 = vmul.f32 %v2726_v6, %v1072_v44  ;;  %v1075_v23 = vmul.f32 %v2727_v46, %v1072_v44 }
 0x103   :  { %1550 = vtanh.f32 %v1049_v37  ;;  %v1076_v45 = vmul.f32 %v2728_v1, %v1072_v44  ;;  %v1077_v17 = vmul.f32 %v2729_v31, %v1072_v44  ;;  %v1078_v61 = vmul.f32 %v2730_v48, %v1072_v44 }
 0x104   :  { %1552 = vtanh.f32 %v1050_v18  ;;  %v1079_v40 = vmul.f32 %v2731_v59, %v1072_v44  ;;  %v1080_v20 = vmul.f32 %v2732_v60, %v1072_v44  ;;  %v1081_v35 = vadd.f32 %v1073_v52, %v1063_v58 }
 0x105   :  { %v2512_v22 = vpop.eup %1542  ;;  %1554 = vtanh.f32 %v1051_v9  ;;  %v1082_v6 = vadd.f32 %v1074_v13, %v1064_v41  ;;  %v1083_v46 = vadd.f32 %v1075_v23, %v1065_v39  ;;  %v1084_v37 = vadd.f32 %v1076_v45, %v1066_v54  ;;  %v2762_v41 = vld [vmem:[#allocation15_spill] sm:$0xff] }
 0x106   :  { %v2514_v1 = vpop.eup %1544  ;;  %1556 = vtanh.f32 %v1052_v28  ;;  %v1085_v31 = vadd.f32 %v1077_v17, %v1067_v55  ;;  %v1086_v48 = vadd.f32 %v1078_v61, %v1068_v3  ;;  %v1087_v42 = vadd.f32 %v1079_v40, %v1069_v24 }
 0x107   :  { %v2516_v29 = vpop.eup %1546  ;;  %v1088_v59 = vadd.f32 %v1080_v20, %v1070_v33  ;;  %v1090_v8 = vstv %s2489_s21  ;;  %v1108_v47 = vstv %s2491_s22  ;;  %v1126_v60 = vstv %s2496_s23 }
 0x108   :  { %v2521_v21 = vpop.eup %1548  ;;  %v1091_v38 = vmul.f32 %v2260_v16, %v1090_v8  ;;  %v1092_v53 = vmul.f32 %v2262_v11, %v1090_v8  ;;  %v1093_v0 = vmul.f32 %v2264_v25, %v1090_v8  ;;  %v1094_v34 = vmul.f32 %v2269_v56, %v1090_v8 }
 0x109   :  { %v2529_v28 = vpop.eup %1550  ;;  %v1095_v18 = vmul.f32 %v2277_v32, %v1090_v8  ;;  %v1096_v63 = vmul.f32 %v2285_v43, %v1090_v8  ;;  %v1097_v9 = vmul.f32 %v2289_v50, %v1090_v8  ;;  %v1098_v49 = vmul.f32 %v2291_v30, %v1090_v8 }
 0x10a   :  { %v2537_v16 = vpop.eup %1552  ;;  %v1099_v11 = vadd.f32 %v1091_v38, %v1081_v35  ;;  %v1100_v25 = vadd.f32 %v1092_v53, %v1082_v6  ;;  %v1101_v2 = vadd.f32 %v1093_v0, %v1083_v46  ;;  %v1102_v56 = vadd.f32 %v1094_v34, %v1084_v37  ;;  %v2763_v6 = vld [vmem:[#allocation16_spill] sm:$0xff]  ;;  %v2764_v37 = vld [vmem:[#allocation17_spill] sm:$0xff] }
 0x10b   :  { %v2541_v4 = vpop.eup %1554  ;;  %v1103_v57 = vadd.f32 %v1095_v18, %v1085_v31  ;;  %v1104_v32 = vadd.f32 %v1096_v63, %v1086_v48  ;;  %v1105_v5 = vadd.f32 %v1097_v9, %v1087_v42  ;;  %v1106_v43 = vadd.f32 %v1098_v49, %v1088_v59  ;;  %v2765_v48 = vld [vmem:[#allocation18_spill] sm:$0xff]  ;;  %v2766_v59 = vld [vmem:[#allocation19_spill] sm:$0xff]  ;;  %v2768_v53 = vld [vmem:[#allocation21_spill] sm:$0xff] }
 0x10c   :  { %v2543_v51 = vpop.eup %1556  ;;  %v1109_v50 = vmul.f32 %v2321_v7, %v1108_v47  ;;  %v1110_v30 = vmul.f32 %v2326_v15, %v1108_v47  ;;  %v1111_v14 = vmul.f32 %v2330_v10, %v1108_v47  ;;  %v1112_v27 = vmul.f32 %v2745_v26, %v1108_v47  ;;  %v2770_v18 = vld [vmem:[#allocation23_spill] sm:$0xff]  ;;  %v2771_v9 = vld [vmem:[#allocation24_spill] sm:$0xff] }
 0x10d   :  { %v1113_v19 = vmul.f32 %v2760_v62, %v1108_v47  ;;  %v1114_v58 = vmul.f32 %v2761_v12, %v1108_v47  ;;  %v1115_v39 = vmul.f32 %v2762_v41, %v1108_v47  ;;  %v1116_v54 = vmul.f32 %v2353_v36, %v1108_v47  ;;  %v2767_v47 = vld [vmem:[#allocation20_spill] sm:$0xff] }
 0x10e   :  { %v1117_v55 = vadd.f32 %v1109_v50, %v1099_v11  ;;  %v1118_v3 = vadd.f32 %v1110_v30, %v1100_v25  ;;  %v1119_v24 = vadd.f32 %v1111_v14, %v1101_v2  ;;  %v1120_v7 = vadd.f32 %v1112_v27, %v1102_v56  ;;  %v2772_v11 = vld [vmem:[#allocation25_spill] sm:$0xff]  ;;  %v2773_v2 = vld [vmem:[#allocation26_spill] sm:$0xff]  ;;  %v2777_v14 = vld [vmem:[#allocation11_spill] sm:$0xff] }
 0x10f   :  { %v1121_v15 = vadd.f32 %v1113_v19, %v1103_v57  ;;  %v1122_v33 = vadd.f32 %v1114_v58, %v1104_v32  ;;  %v1123_v10 = vadd.f32 %v1115_v39, %v1105_v5  ;;  %v1124_v44 = vadd.f32 %v1116_v54, %v1106_v43  ;;  %v2774_v57 = vld [vmem:[#allocation27_spill] sm:$0xff]  ;;  %v2775_v5 = vld [vmem:[#allocation28_spill] sm:$0xff]  ;;  %v2776_v50 = vld [vmem:[#allocation29_spill] sm:$0xff] }
 0x110   :  { %v1127_v26 = vadd.f32 %v1126_v60, %v1117_v55  ;;  %v1128_v52 = vadd.f32 %v1126_v60, %v1118_v3  ;;  %v1129_v13 = vadd.f32 %v1126_v60, %v1119_v24  ;;  %v1130_v23 = vadd.f32 %v1126_v60, %v1120_v7  ;;  %v2778_v19 = vld [vmem:[#allocation12_spill] sm:$0xff] }
 0x111   :  { %v1131_v45 = vadd.f32 %v1126_v60, %v1121_v15  ;;  %v1132_v17 = vadd.f32 %v1126_v60, %v1122_v33  ;;  %v1133_v61 = vadd.f32 %v1126_v60, %v1123_v10  ;;  %v1134_v40 = vadd.f32 %v1126_v60, %v1124_v44  ;;  %v2769_v60 = vld [vmem:[#allocation22_spill] sm:$0xff] }
 0x112   :  { %1558 = vtanh.f32 %v1127_v26  ;;  %v1144_v36 = vstv %s2527_s24  ;;  %v1154_v20 = vstv %s2535_s25  ;;  %v1172_v35 = vstv %s2539_s26 }
 0x113   :  { %1560 = vtanh.f32 %v1128_v52  ;;  %v1145_v46 = vmul.f32 %v2763_v6, %v1144_v36  ;;  %v1146_v31 = vmul.f32 %v2764_v37, %v1144_v36  ;;  %v1147_v42 = vmul.f32 %v2765_v48, %v1144_v36 }
 0x114   :  { %1562 = vtanh.f32 %v1129_v13  ;;  %v1148_v8 = vmul.f32 %v2766_v59, %v1144_v36  ;;  %v1149_v38 = vmul.f32 %v2767_v47, %v1144_v36  ;;  %v1150_v0 = vmul.f32 %v2768_v53, %v1144_v36 }
 0x115   :  { %1564 = vtanh.f32 %v1130_v23  ;;  %v1151_v34 = vmul.f32 %v2769_v60, %v1144_v36  ;;  %v1152_v63 = vmul.f32 %v2770_v18, %v1144_v36  ;;  %v1155_v49 = vmul.f32 %v2771_v9, %v1154_v20 }
 0x116   :  { %1566 = vtanh.f32 %v1131_v45  ;;  %v1156_v25 = vmul.f32 %v2772_v11, %v1154_v20  ;;  %v1157_v56 = vmul.f32 %v2773_v2, %v1154_v20  ;;  %v1158_v32 = vmul.f32 %v2774_v57, %v1154_v20 }
 0x117   :  { %1568 = vtanh.f32 %v1132_v17  ;;  %v1159_v43 = vmul.f32 %v2775_v5, %v1154_v20  ;;  %v1160_v30 = vmul.f32 %v2776_v50, %v1154_v20  ;;  %v1161_v27 = vmul.f32 %v2777_v14, %v1154_v20 }
 0x118   :  { %v1559_v62 = vpop.eup %1558  ;;  %1570 = vtanh.f32 %v1133_v61  ;;  %v1162_v12 = vmul.f32 %v2778_v19, %v1154_v20  ;;  %v1163_v58 = vadd.f32 %v1155_v49, %v1145_v46  ;;  %v1164_v41 = vadd.f32 %v1156_v25, %v1146_v31 }
 0x119   :  { %v1561_v39 = vpop.eup %1560  ;;  %1572 = vtanh.f32 %v1134_v40  ;;  %v1165_v54 = vadd.f32 %v1157_v56, %v1147_v42  ;;  %v1166_v55 = vadd.f32 %v1158_v32, %v1148_v8  ;;  %v1167_v3 = vadd.f32 %v1159_v43, %v1149_v38 }
 0x11a   :  { %v1563_v24 = vpop.eup %1562  ;;  %v1168_v7 = vadd.f32 %v1160_v30, %v1150_v0  ;;  %v1169_v15 = vadd.f32 %v1161_v27, %v1151_v34  ;;  %v1170_v33 = vadd.f32 %v1162_v12, %v1152_v63  ;;  %v1173_v10 = vmul.f32 %v2512_v22, %v1172_v35 }
 0x11b   :  { %v1565_v44 = vpop.eup %1564  ;;  %v1174_v26 = vmul.f32 %v2514_v1, %v1172_v35  ;;  %v1175_v52 = vmul.f32 %v2516_v29, %v1172_v35  ;;  %v1176_v13 = vmul.f32 %v2521_v21, %v1172_v35  ;;  %v1177_v23 = vmul.f32 %v2529_v28, %v1172_v35 }
 0x11c   :  { %v1567_v45 = vpop.eup %1566  ;;  %v1178_v17 = vmul.f32 %v2537_v16, %v1172_v35  ;;  %v1179_v61 = vmul.f32 %v2541_v4, %v1172_v35  ;;  %v1180_v40 = vmul.f32 %v2543_v51, %v1172_v35  ;;  %v1181_v22 = vadd.f32 %v1173_v10, %v1163_v58 }
 0x11d   :  { %v1569_v36 = vpop.eup %1568  ;;  %v1182_v20 = vadd.f32 %v1174_v26, %v1164_v41  ;;  %v1183_v1 = vadd.f32 %v1175_v52, %v1165_v54  ;;  %v1184_v6 = vadd.f32 %v1176_v13, %v1166_v55  ;;  %v1185_v29 = vadd.f32 %v1177_v23, %v1167_v3 }
 0x11e   :  { %v1571_v46 = vpop.eup %1570  ;;  %v1186_v21 = vadd.f32 %v1178_v17, %v1168_v7  ;;  %v1187_v37 = vadd.f32 %v1179_v61, %v1169_v15  ;;  %v1188_v28 = vadd.f32 %v1180_v40, %v1170_v33  ;;  %v1190_v31 = vstv %s2568_s27 }
 0x11f   :  { %v1573_v48 = vpop.eup %1572  ;;  %v1191_v42 = vmul.f32 %v1559_v62, %v1190_v31  ;;  %v1192_v59 = vmul.f32 %v1561_v39, %v1190_v31  ;;  %v1193_v16 = vmul.f32 %v1563_v24, %v1190_v31  ;;  %v1194_v8 = vmul.f32 %v1565_v44, %v1190_v31 }
 0x120   :  { %v1195_v4 = vmul.f32 %v1567_v45, %v1190_v31  ;;  %v1196_v47 = vmul.f32 %v1569_v36, %v1190_v31  ;;  %v1197_v51 = vmul.f32 %v1571_v46, %v1190_v31  ;;  %v1198_v35 = vmul.f32 %v1573_v48, %v1190_v31 }
 0x121   :  { %v1199_v38 = vadd.f32 %v1191_v42, %v1181_v22  ;;  %v1200_v53 = vadd.f32 %v1192_v59, %v1182_v20  ;;  %v1201_v0 = vadd.f32 %v1193_v16, %v1183_v1  ;;  %v1202_v60 = vadd.f32 %v1194_v8, %v1184_v6 }
 0x122   :  { %v1203_v34 = vadd.f32 %v1195_v4, %v1185_v29  ;;  %v1204_v18 = vadd.f32 %v1196_v47, %v1186_v21  ;;  %v1208_v63 = vstv %s2579_s28  ;;  %v1205_v9 = vadd.f32 %v1197_v51, %v1187_v37 }
 0x123   :  { %v1209_v49 = vadd.f32 %v1208_v63, %v1199_v38  ;;  %v1210_v11 = vadd.f32 %v1208_v63, %v1200_v53  ;;  %v1211_v25 = vadd.f32 %v1208_v63, %v1201_v0  ;;  %v1206_v2 = vadd.f32 %v1198_v35, %v1188_v28 }
 0x124   :  { %v1212_v56 = vadd.f32 %v1208_v63, %v1202_v60  ;;  %v1213_v57 = vadd.f32 %v1208_v63, %v1203_v34  ;;  %v1214_v32 = vadd.f32 %v1208_v63, %v1204_v18  ;;  %v1215_v5 = vadd.f32 %v1208_v63, %v1205_v9 }
 0x125   :  { %1217 = vst [vmem:[#allocation7] sm:$0xff] %v1209_v49  ;;  %v1216_v43 = vadd.f32 %v1208_v63, %v1206_v2 }
 0x126   :  { %1218 = vst [vmem:[#allocation7 + $0x8] sm:$0xff] %v1210_v11 }
 0x127   :  { %1219 = vst [vmem:[#allocation7 + $0x10] sm:$0xff] %v1211_v25 }
 0x128   :  { %1220 = vst [vmem:[#allocation7 + $0x18] sm:$0xff] %v1212_v56 }
 0x129   :  { %1221 = vst [vmem:[#allocation7 + $0x20] sm:$0xff] %v1213_v57 }
 0x12a   :  { %1222 = vst [vmem:[#allocation7 + $0x28] sm:$0xff] %v1214_v32 }
 0x12b   :  { %1223 = vst [vmem:[#allocation7 + $0x30] sm:$0xff] %v1215_v5 }
 0x12c   :  { %1224 = vst [vmem:[#allocation7 + $0x38] sm:$0xff] %v1216_v43 }
 0x12d   :  { %1235 = dma.vmem_to_hbm [thread:$0]  %s1231_s30, 1024, %s1233_s5, [#allocation4]  }
 0x12e   :  { %1638 = dma.done.wait [#allocation4], 1024  }
 0x12f   :  { %1639 = vsyncadd [#allocation4], 4294966272 }
 0x130   :  { %1240 = vsyncpa [#allocation3], 1 }
 0x131   :  { %1241 = vsyncpa [#allocation4], 1 }
 0x132   :  { %1242 = vsyncpa [#allocation5], 1 }

</bundles_post_ra>
